<compile_context>
chip_gen: v6e
topology: v6e:2x2x1
jax: 0.10.0
libtpu: 0.0.40
codegen_flags: <defaults>
</compile_context>

<pallas_src>
import functools

import numpy as np
import jax
import jax.numpy as jnp
from jax import lax
from jax.experimental import pallas as pl
from jax.experimental.pallas import tpu as pltpu

CONVS_DIM = 64          # convs_dim (must be divisible by 32 for GroupNorm(32, .))
NUM_GROUPS = 32
CPG = CONVS_DIM // NUM_GROUPS
EPS = 1e-5


# ----------------------------- in-kernel helpers -----------------------------

def _gn_scale_shift(s, sq, count, gamma, beta, pmat):
    """GroupNorm as a per-channel affine (scale, shift), from per-channel sum / sum-sq.

    pmat is the (C, C) same-group 0/1 indicator, so `stats @ pmat` broadcasts each
    group's total back to its channels (two tiny MXU ops; negligible next to the convs).
    Stats stay in f32; var is clamped at 0 to guard E[x^2]-mean^2 cancellation.
    """
    gs = jnp.dot(s, pmat, preferred_element_type=jnp.float32)
    gsq = jnp.dot(sq, pmat, preferred_element_type=jnp.float32)
    mean = gs / count
    var = jnp.maximum(gsq / count - mean * mean, 0.0)
    inv = lax.rsqrt(var + EPS)
    scale = gamma * inv
    shift = beta - mean * scale
    return scale, shift


def _lateral_into_pad(xp_ref, latw_ref, latg_ref, latb_ref, pmat_ref, maskp_ref,
                      pad_ref, *, H, W, cpg):
    """1x1 conv (no bias) + GroupNorm over the zero-padded flat plane -> pad_ref."""
    lat = jnp.dot(xp_ref[0], latw_ref[...], preferred_element_type=jnp.float32)
    # pad rows of xp are exactly zero, so per-channel sums over the padded plane equal
    # the interior sums; only the element count has to be the interior one.
    s = jnp.sum(lat, axis=0, keepdims=True)
    sq = jnp.sum(lat * lat, axis=0, keepdims=True)
    scale, shift = _gn_scale_shift(s, sq, float(H * W * cpg),
                                   latg_ref[...], latb_ref[...], pmat_ref[...])
    # the affine shift would contaminate the zero padding -> mask it back to zero.
    pad_ref[...] = (lat * scale + shift) * maskp_ref[...]


def _conv3x3_gn_relu_store(pad_ref, outw_ref, outg_ref, outb_ref, pmat_ref, maskv_ref,
                           o_ref, *, H, W, cpg):
    """3x3 conv (zero pad already in pad_ref) + GroupNorm + ReLU, stored padded."""
    pitch = W + 2
    P = (H + 2) * pitch
    L = (H - 1) * pitch + W          # slab length covering all valid output positions
    C = outw_ref.shape[2]
    # 9 whole-plane matmuls: tap (dh, dw) reads one contiguous (L, C) slab of the padded
    # plane at flat offset dh*pitch + dw.  Output pixel (r, c) lands at flat position
    # r*pitch + c; positions with (p % pitch) >= W are row wrap-around junk and are
    # masked out of the GroupNorm statistics (and never extracted).
    acc = jnp.zeros((L, C), jnp.float32)
    for dh in range(3):
        for dw in range(3):
            off = dh * pitch + dw
            slab = pad_ref[off:off + L, :].astype(outw_ref.dtype)
            acc = acc + jnp.dot(slab, outw_ref[dh * 3 + dw],
                                preferred_element_type=jnp.float32)
    valid = maskv_ref[...]
    am = acc * valid
    s = jnp.sum(am, axis=0, keepdims=True)
    sq = jnp.sum(am * acc, axis=0, keepdims=True)
    scale, shift = _gn_scale_shift(s, sq, float(H * W * cpg),
                                   outg_ref[...], outb_ref[...], pmat_ref[...])
    y = jnp.maximum(acc * scale + shift, 0.0) * valid
    # Valid data keeps the padded row pitch, so one offset store lines it up with the
    # zero-padded output plane (no per-row extraction).
    o_ref[0] = jnp.zeros((P, C), o_ref.dtype)
    o_ref[0, pitch + 1:pitch + 1 + L, :] = y.astype(o_ref.dtype)


# --------------------------------- kernels -----------------------------------

def _fpn_level0_kernel(xp_ref, latw_ref, latg_ref, latb_ref, pmat_ref, maskp_ref,
                       maskv_ref, outw_ref, outg_ref, outb_ref,
                       o_ref, pad_ref, *, H, W, cpg):
    _lateral_into_pad(xp_ref, latw_ref, latg_ref, latb_ref, pmat_ref, maskp_ref,
                      pad_ref, H=H, W=W, cpg=cpg)
    _conv3x3_gn_relu_store(pad_ref, outw_ref, outg_ref, outb_ref, pmat_ref, maskv_ref,
                           o_ref, H=H, W=W, cpg=cpg)


def _fpn_level_kernel(xp_ref, latw_ref, latg_ref, latb_ref, pmat_ref, maskp_ref,
                      maskv_ref, yprev_ref, aw_ref, outw_ref, outg_ref, outb_ref,
                      o_ref, pad_ref, t1_ref, *, H, W, Hs, Ws, h_taps, cpg):
    pitch = W + 2
    _lateral_into_pad(xp_ref, latw_ref, latg_ref, latb_ref, pmat_ref, maskp_ref,
                      pad_ref, H=H, W=W, cpg=cpg)
    # Separable bilinear (align_corners=False) upsample of the previous (padded) level.
    # W direction: one small MXU matmul per source row, cached in VMEM.
    for hs in range(Hs):
        src = yprev_ref[0, hs + 1, 1:Ws + 1, :].astype(aw_ref.dtype)        # (Ws, C)
        t1_ref[hs] = jnp.dot(aw_ref[...], src, preferred_element_type=jnp.float32)
    # H direction: bilinear = 2-tap lerp per output row (VPU), added in place into the
    # padded conv-input plane.
    for r in range(H):
        i0, i1, lam = h_taps[r]
        up = (1.0 - lam) * t1_ref[i0] + lam * t1_ref[i1]                    # (W, C)
        a = (r + 1) * pitch + 1
        pad_ref[a:a + W, :] = pad_ref[a:a + W, :] + up
    _conv3x3_gn_relu_store(pad_ref, outw_ref, outg_ref, outb_ref, pmat_ref, maskv_ref,
                           o_ref, H=H, W=W, cpg=cpg)


# -------------------- host-side constants (hoisted, per shape) ----------------

def _interp_taps(out_size, in_size):
    """(i0, i1, lam) per output index for 1-D bilinear, align_corners=False."""
    taps = []
    scale = in_size / out_size
    for o in range(out_size):
        src = max((o + 0.5) * scale - 0.5, 0.0)
        i0 = min(int(np.floor(src)), in_size - 1)
        i1 = min(i0 + 1, in_size - 1)
        taps.append((i0, i1, float(src - i0)))
    return tuple(taps)


def _interp_matrix(out_size, in_size):
    a = np.zeros((out_size, in_size), np.float32)
    for o, (i0, i1, lam) in enumerate(_interp_taps(out_size, in_size)):
        a[o, i0] += 1.0 - lam
        a[o, i1] += lam
    return a


def _plane_masks(H, W):
    pitch = W + 2
    p = np.arange((H + 2) * pitch)
    interior = ((p // pitch >= 1) & (p // pitch <= H)
                & (p % pitch >= 1) & (p % pitch <= W)).astype(np.float32)
    L = (H - 1) * pitch + W
    q = np.arange(L)
    valid = ((q % pitch) < W).astype(np.float32)
    return jnp.asarray(interior[:, None]), jnp.asarray(valid[:, None])


def make_group_pool_matrix(c=CONVS_DIM, groups=NUM_GROUPS):
    grp = np.arange(c) // (c // groups)
    return jnp.asarray((grp[:, None] == grp[None, :]).astype(np.float32))


def prepare_fpn(params, feature_hw, in_features, matmul_dtype=jnp.bfloat16):
    """Cast conv weights once, precompute per-level masks / upsample constants."""
    prepped = {}
    prev_hw = None
    for idx, f in enumerate(in_features[::-1]):          # coarsest -> finest
        p = params[f]
        H, W = feature_hw[f]
        maskp, maskv = _plane_masks(H, W)
        entry = dict(
            lat_w=p['lat_w'].astype(matmul_dtype),
            lat_g=p['lat_g'], lat_b=p['lat_b'],
            out_w=p['out_w'].astype(matmul_dtype),
            out_g=p['out_g'], out_b=p['out_b'],
            maskp=maskp, maskv=maskv, hw=(H, W),
        )
        if idx > 0:
            Hs, Ws = prev_hw
            entry['a_w'] = jnp.asarray(_interp_matrix(W, Ws)).astype(matmul_dtype)
            entry['h_taps'] = _interp_taps(H, Hs)
            entry['src_hw'] = (Hs, Ws)
        prev_hw = (H, W)
        prepped[f] = entry
    return prepped


# ------------------------------ BaseFPN forward --------------------------------

def base_fpn_forward_features(features, prepped, pmat, in_features, num_feature_levels=3):
    """Mirrors BaseFPN.forward_features: returns (None, multi_scale_features)."""
    C = CONVS_DIM
    msf_padded = []
    y_pad = None                                        # previous level, zero-padded NHWC
    for idx, f in enumerate(in_features[::-1]):         # coarsest first
        x = features[f]
        e = prepped[f]
        n, H, W, cin = x.shape
        pitch = W + 2
        P = (H + 2) * pitch
        Lv = (H - 1) * pitch + W
        # zero-pad the backbone feature so the fused kernel produces the padded
        # conv-input plane directly (1x1 conv of zeros is zero: no bias).
        xp = jnp.pad(x, ((0, 0), (1, 1), (1, 1), (0, 0))).astype(e['lat_w'].dtype)
        xp = xp.reshape(n, P, cin)

        common_specs = [
            pl.BlockSpec((1, P, cin), lambda i: (i, 0, 0)),       # xp
            pl.BlockSpec((cin, C), lambda i: (0, 0)),             # lat_w
            pl.BlockSpec((1, C), lambda i: (0, 0)),               # lat_g
            pl.BlockSpec((1, C), lambda i: (0, 0)),               # lat_b
            pl.BlockSpec((C, C), lambda i: (0, 0)),               # pmat
            pl.BlockSpec((P, 1), lambda i: (0, 0)),               # maskp
            pl.BlockSpec((Lv, 1), lambda i: (0, 0)),              # maskv
        ]
        tail_specs = [
            pl.BlockSpec((9, C, C), lambda i: (0, 0, 0)),         # out_w
            pl.BlockSpec((1, C), lambda i: (0, 0)),               # out_g
            pl.BlockSpec((1, C), lambda i: (0, 0)),               # out_b
        ]
        out_spec = pl.BlockSpec((1, P, C), lambda i: (i, 0, 0))
        out_shape = jax.ShapeDtypeStruct((n, P, C), jnp.float32)
        cparams = pltpu.CompilerParams(dimension_semantics=("parallel",))

        if idx == 0:
            out = pl.pallas_call(
                functools.partial(_fpn_level0_kernel, H=H, W=W, cpg=CPG),
                out_shape=out_shape,
                grid=(n,),
                in_specs=common_specs + tail_specs,
                out_specs=out_spec,
                scratch_shapes=[pltpu.VMEM((P, C), jnp.float32)],
                compiler_params=cparams,
            )(xp, e['lat_w'], e['lat_g'], e['lat_b'], pmat, e['maskp'], e['maskv'],
              e['out_w'], e['out_g'], e['out_b'])
        else:
            Hs, Ws = e['src_hw']
            mid_specs = [
                pl.BlockSpec((1, Hs + 2, Ws + 2, C), lambda i: (i, 0, 0, 0)),  # y_prev
                pl.BlockSpec((W, Ws), lambda i: (0, 0)),                       # a_w
            ]
            out = pl.pallas_call(
                functools.partial(_fpn_level_kernel, H=H, W=W, Hs=Hs, Ws=Ws,
                                  h_taps=e['h_taps'], cpg=CPG),
                out_shape=out_shape,
                grid=(n,),
                in_specs=common_specs + mid_specs + tail_specs,
                out_specs=out_spec,
                scratch_shapes=[pltpu.VMEM((P, C), jnp.float32),
                                pltpu.VMEM((Hs, W, C), jnp.float32)],
                compiler_params=cparams,
            )(xp, e['lat_w'], e['lat_g'], e['lat_b'], pmat, e['maskp'], e['maskv'],
              y_pad, e['a_w'], e['out_w'], e['out_g'], e['out_b'])

        y_pad = out.reshape(n, H + 2, W + 2, C)
        if len(msf_padded) < num_feature_levels:
            msf_padded.append(y_pad)
    # strip the zero padding once, outside the kernels
    multi_scale_features = [m[:, 1:-1, 1:-1, :] for m in msf_padded]
    return None, multi_scale_features


# ------------------------------ pure-JAX reference ------------------------------

def _ref_groupnorm(x, gamma, beta, groups=NUM_GROUPS, eps=EPS):
    n, h, w, c = x.shape
    xg = x.reshape(n, h, w, groups, c // groups)
    mean = xg.mean(axis=(1, 2, 4), keepdims=True)
    var = ((xg - mean) ** 2).mean(axis=(1, 2, 4), keepdims=True)
    xn = ((xg - mean) / jnp.sqrt(var + eps)).reshape(n, h, w, c)
    return xn * gamma.reshape(1, 1, 1, c) + beta.reshape(1, 1, 1, c)


def ref_forward_features(features, params, in_features):
    msf = []
    y = None
    for idx, f in enumerate(in_features[::-1]):
        x = features[f]
        p = params[f]
        lat = jnp.einsum('nhwi,io->nhwo', x, p['lat_w'])
        lat = _ref_groupnorm(lat, p['lat_g'][0], p['lat_b'][0])
        if idx == 0:
            y = lat
        else:
            n, hs, ws, c = y.shape
            ht, wt = x.shape[1], x.shape[2]
            bmat = jnp.asarray(np.kron(_interp_matrix(ht, hs), _interp_matrix(wt, ws)))
            up = jnp.einsum('ts,nsc->ntc', bmat,
                            y.reshape(n, hs * ws, c)).reshape(n, ht, wt, c)
            y = lat + up
        w3 = p['out_w'].reshape(3, 3, CONVS_DIM, CONVS_DIM)
        conv = lax.conv_general_dilated(y, w3, (1, 1), ((1, 1), (1, 1)),
                                        dimension_numbers=('NHWC', 'HWIO', 'NHWC'))
        conv = _ref_groupnorm(conv, p['out_g'][0], p['out_b'][0])
        y = jax.nn.relu(conv)
        msf.append(y)
    return msf


# ------------------------------------ main --------------------------------------

if __name__ == "__main__":
    # input_shape as in the module (channels + stride per backbone feature)
    input_shape = {
        'res3': {'channels': 16, 'stride': 8},
        'res4': {'channels': 32, 'stride': 16},
        'res5': {'channels': 64, 'stride': 32},
    }
    in_features = [k for k, v in sorted(input_shape.items(), key=lambda x: x[1]['stride'])]
    spatial = {'res3': 16, 'res4': 8, 'res5': 4}
    batch = 2

    key = jax.random.PRNGKey(0)
    keys = iter(jax.random.split(key, 64))

    # deterministic synthetic inputs (NHWC)
    features = {}
    for f in in_features:
        s = spatial[f]
        cin = input_shape[f]['channels']
        features[f] = jax.random.normal(next(keys), (batch, s, s, cin), jnp.float32)

    # deterministic synthetic parameters (conv weights + GroupNorm affine, no conv bias
    # since use_bias = (norm == '') is False for GroupNorm)
    params = {}
    for f in in_features:
        cin = input_shape[f]['channels']
        params[f] = dict(
            lat_w=0.05 * jax.random.normal(next(keys), (cin, CONVS_DIM), jnp.float32),
            lat_g=1.0 + 0.1 * jax.random.normal(next(keys), (1, CONVS_DIM), jnp.float32),
            lat_b=0.1 * jax.random.normal(next(keys), (1, CONVS_DIM), jnp.float32),
            out_w=0.05 * jax.random.normal(next(keys), (9, CONVS_DIM, CONVS_DIM), jnp.float32),
            out_g=1.0 + 0.1 * jax.random.normal(next(keys), (1, CONVS_DIM), jnp.float32),
            out_b=0.1 * jax.random.normal(next(keys), (1, CONVS_DIM), jnp.float32),
        )

    pmat = make_group_pool_matrix()
    feature_hw = {f: (spatial[f], spatial[f]) for f in in_features}

    ref = ref_forward_features(features, params, in_features)

    # f32 matmul path: tight check against the pure-JAX reference
    prep_f32 = prepare_fpn(params, feature_hw, in_features, matmul_dtype=jnp.float32)
    _, msf_f32 = base_fpn_forward_features(features, prep_f32, pmat, in_features)
    msf_f32 = [jax.block_until_ready(m) for m in msf_f32]
    for got, exp in zip(msf_f32, ref):
        assert got.shape == exp.shape, (got.shape, exp.shape)
        err = float(jnp.max(jnp.abs(got - exp)))
        assert err < 2e-3, f"f32 max abs err {err}"

    # bf16 matmul inputs (f32 accumulation, f32 GroupNorm stats): looser tolerance
    prep_bf16 = prepare_fpn(params, feature_hw, in_features, matmul_dtype=jnp.bfloat16)
    _, msf_bf16 = base_fpn_forward_features(features, prep_bf16, pmat, in_features)
    msf_bf16 = [jax.block_until_ready(m) for m in msf_bf16]
    for got, exp in zip(msf_bf16, ref):
        assert got.shape == exp.shape, (got.shape, exp.shape)
        err = float(jnp.max(jnp.abs(got - exp)))
        assert err < 8e-2, f"bf16 max abs err {err}"   # typically ~2e-2

    print("KERNEL_OK")
</pallas_src>

<mosaic_0001>
module attributes {stable_mosaic.version = 11 : i64} {
  func.func @_fpn_level0_kernel(%arg0: i32, %arg1: memref<1x36x64xf32, #tpu.memory_space<vmem>>, %arg2: memref<64x64xf32, #tpu.memory_space<vmem>>, %arg3: memref<1x64xf32, #tpu.memory_space<vmem>>, %arg4: memref<1x64xf32, #tpu.memory_space<vmem>>, %arg5: memref<64x64xf32, #tpu.memory_space<vmem>>, %arg6: memref<36x1xf32, #tpu.memory_space<vmem>>, %arg7: memref<22x1xf32, #tpu.memory_space<vmem>>, %arg8: memref<9x64x64xf32, #tpu.memory_space<vmem>>, %arg9: memref<1x64xf32, #tpu.memory_space<vmem>>, %arg10: memref<1x64xf32, #tpu.memory_space<vmem>>, %arg11: memref<1x36x64xf32, #tpu.memory_space<vmem>>, %arg12: memref<36x64xf32, #tpu.memory_space<vmem>>) attributes {dimension_semantics = [#tpu.dimension_semantics<parallel>], iteration_bounds = array<i64: 2>, scalar_prefetch = 0 : i64, scratch_operands = 1 : i64, tpu.core_type = #tpu.core_type<tc>, window_params = [{transform_indices = @transform_0, window_bounds = array<i64: 1, 36, 64>}, {pipeline_mode = #tpu.pipeline_mode<synchronous>, transform_indices = @transform_1, window_bounds = array<i64: 64, 64>}, {pipeline_mode = #tpu.pipeline_mode<synchronous>, transform_indices = @transform_2, window_bounds = array<i64: 1, 64>}, {pipeline_mode = #tpu.pipeline_mode<synchronous>, transform_indices = @transform_3, window_bounds = array<i64: 1, 64>}, {pipeline_mode = #tpu.pipeline_mode<synchronous>, transform_indices = @transform_4, window_bounds = array<i64: 64, 64>}, {pipeline_mode = #tpu.pipeline_mode<synchronous>, transform_indices = @transform_5, window_bounds = array<i64: 36, 1>}, {pipeline_mode = #tpu.pipeline_mode<synchronous>, transform_indices = @transform_6, window_bounds = array<i64: 22, 1>}, {pipeline_mode = #tpu.pipeline_mode<synchronous>, transform_indices = @transform_7, window_bounds = array<i64: 9, 64, 64>}, {pipeline_mode = #tpu.pipeline_mode<synchronous>, transform_indices = @transform_8, window_bounds = array<i64: 1, 64>}, {pipeline_mode = #tpu.pipeline_mode<synchronous>, transform_indices = @transform_9, window_bounds = array<i64: 1, 64>}, {transform_indices = @transform_10, window_bounds = array<i64: 1, 36, 64>}]} {
    %c0 = arith.constant 0 : index
    %c0_0 = arith.constant 0 : index
    %c0_1 = arith.constant 0 : index
    %0 = vector.load %arg1[%c0, %c0_0, %c0_1] : memref<1x36x64xf32, #tpu.memory_space<vmem>>, vector<1x36x64xf32>
    %1 = vector.shape_cast %0 : vector<1x36x64xf32> to vector<36x64xf32>
    %c0_2 = arith.constant 0 : index
    %c0_3 = arith.constant 0 : index
    %2 = vector.load %arg2[%c0_2, %c0_3] : memref<64x64xf32, #tpu.memory_space<vmem>>, vector<64x64xf32>
    %cst = arith.constant dense<0.000000e+00> : vector<36x64xf32>
    %3 = tpu.matmul %1, %2, %cst {dimension_numbers = #tpu.dot_dimension_numbers<[1], [0], [0], [1], [0, 0, 1, 1], [], []>} : vector<36x64xf32>, vector<64x64xf32>, vector<36x64xf32> -> vector<36x64xf32>
    %cst_4 = arith.constant dense<0.000000e+00> : vector<64xf32>
    %4 = vector.multi_reduction <add>, %3, %cst_4 [0] : vector<36x64xf32> to vector<64xf32>
    %5 = vector.shape_cast %4 : vector<64xf32> to vector<1x64xf32>
    %6 = arith.mulf %3, %3 : vector<36x64xf32>
    %cst_5 = arith.constant dense<0.000000e+00> : vector<64xf32>
    %7 = vector.multi_reduction <add>, %6, %cst_5 [0] : vector<36x64xf32> to vector<64xf32>
    %8 = vector.shape_cast %7 : vector<64xf32> to vector<1x64xf32>
    %c0_6 = arith.constant 0 : index
    %c0_7 = arith.constant 0 : index
    %9 = vector.load %arg3[%c0_6, %c0_7] : memref<1x64xf32, #tpu.memory_space<vmem>>, vector<1x64xf32>
    %c0_8 = arith.constant 0 : index
    %c0_9 = arith.constant 0 : index
    %10 = vector.load %arg4[%c0_8, %c0_9] : memref<1x64xf32, #tpu.memory_space<vmem>>, vector<1x64xf32>
    %c0_10 = arith.constant 0 : index
    %c0_11 = arith.constant 0 : index
    %11 = vector.load %arg5[%c0_10, %c0_11] : memref<64x64xf32, #tpu.memory_space<vmem>>, vector<64x64xf32>
    %cst_12 = arith.constant dense<0.000000e+00> : vector<1x64xf32>
    %12 = tpu.matmul %5, %11, %cst_12 {dimension_numbers = #tpu.dot_dimension_numbers<[1], [0], [0], [1], [0, 0, 1, 1], [], []>} : vector<1x64xf32>, vector<64x64xf32>, vector<1x64xf32> -> vector<1x64xf32>
    %cst_13 = arith.constant dense<0.000000e+00> : vector<1x64xf32>
    %13 = tpu.matmul %8, %11, %cst_13 {dimension_numbers = #tpu.dot_dimension_numbers<[1], [0], [0], [1], [0, 0, 1, 1], [], []>} : vector<1x64xf32>, vector<64x64xf32>, vector<1x64xf32> -> vector<1x64xf32>
    %cst_14 = arith.constant 3.200000e+01 : f32
    %14 = vector.broadcast %cst_14 : f32 to vector<1x64xf32>
    %15 = arith.divf %12, %14 : vector<1x64xf32>
    %cst_15 = arith.constant 3.200000e+01 : f32
    %16 = vector.broadcast %cst_15 : f32 to vector<1x64xf32>
    %17 = arith.divf %13, %16 : vector<1x64xf32>
    %18 = arith.mulf %15, %15 : vector<1x64xf32>
    %19 = arith.subf %17, %18 : vector<1x64xf32>
    %cst_16 = arith.constant 0.000000e+00 : f32
    %20 = vector.broadcast %cst_16 : f32 to vector<1x64xf32>
    %21 = arith.maximumf %19, %20 : vector<1x64xf32>
    %cst_17 = arith.constant 9.99999974E-6 : f32
    %22 = vector.broadcast %cst_17 : f32 to vector<1x64xf32>
    %23 = arith.addf %21, %22 : vector<1x64xf32>
    %24 = math.rsqrt %23 : vector<1x64xf32>
    %25 = arith.mulf %9, %24 : vector<1x64xf32>
    %26 = arith.mulf %15, %25 : vector<1x64xf32>
    %27 = arith.subf %10, %26 : vector<1x64xf32>
    %28 = vector.broadcast %25 : vector<1x64xf32> to vector<36x64xf32>
    %29 = arith.mulf %3, %28 : vector<36x64xf32>
    %30 = vector.broadcast %27 : vector<1x64xf32> to vector<36x64xf32>
    %31 = arith.addf %29, %30 : vector<36x64xf32>
    %c0_18 = arith.constant 0 : index
    %c0_19 = arith.constant 0 : index
    %32 = vector.load %arg6[%c0_18, %c0_19] : memref<36x1xf32, #tpu.memory_space<vmem>>, vector<36x1xf32>
    %33 = vector.broadcast %32 : vector<36x1xf32> to vector<36x64xf32>
    %34 = arith.mulf %31, %33 : vector<36x64xf32>
    %c0_20 = arith.constant 0 : index
    %c0_21 = arith.constant 0 : index
    %35 = vector.load %arg12[%c0_20, %c0_21] : memref<36x64xf32, #tpu.memory_space<vmem>>, vector<36x64xf32>
    tpu.vector_store %arg12[%c0_20, %c0_21], %34 {strides = array<i32>} : memref<36x64xf32, #tpu.memory_space<vmem>>, vector<36x64xf32>,
    %cst_22 = arith.constant 0.000000e+00 : f32
    %36 = vector.broadcast %cst_22 : f32 to vector<22x64xf32>
    %c0_23 = arith.constant 0 : index
    %c0_24 = arith.constant 0 : index
    %37 = vector.load %arg12[%c0_23, %c0_24] : memref<36x64xf32, #tpu.memory_space<vmem>>, vector<22x64xf32>
    %c0_25 = arith.constant 0 : index
    %c0_26 = arith.constant 0 : index
    %c0_27 = arith.constant 0 : index
    %38 = vector.load %arg8[%c0_25, %c0_26, %c0_27] : memref<9x64x64xf32, #tpu.memory_space<vmem>>, vector<1x64x64xf32>
    %39 = vector.shape_cast %38 : vector<1x64x64xf32> to vector<64x64xf32>
    %cst_28 = arith.constant dense<0.000000e+00> : vector<22x64xf32>
    %40 = tpu.matmul %37, %39, %cst_28 {dimension_numbers = #tpu.dot_dimension_numbers<[1], [0], [0], [1], [0, 0, 1, 1], [], []>} : vector<22x64xf32>, vector<64x64xf32>, vector<22x64xf32> -> vector<22x64xf32>
    %41 = arith.addf %36, %40 : vector<22x64xf32>
    %c1 = arith.constant 1 : index
    %c0_29 = arith.constant 0 : index
    %42 = vector.load %arg12[%c1, %c0_29] : memref<36x64xf32, #tpu.memory_space<vmem>>, vector<22x64xf32>
    %c1_30 = arith.constant 1 : index
    %c0_31 = arith.constant 0 : index
    %c0_32 = arith.constant 0 : index
    %43 = vector.load %arg8[%c1_30, %c0_31, %c0_32] : memref<9x64x64xf32, #tpu.memory_space<vmem>>, vector<1x64x64xf32>
    %44 = vector.shape_cast %43 : vector<1x64x64xf32> to vector<64x64xf32>
    %cst_33 = arith.constant dense<0.000000e+00> : vector<22x64xf32>
    %45 = tpu.matmul %42, %44, %cst_33 {dimension_numbers = #tpu.dot_dimension_numbers<[1], [0], [0], [1], [0, 0, 1, 1], [], []>} : vector<22x64xf32>, vector<64x64xf32>, vector<22x64xf32> -> vector<22x64xf32>
    %46 = arith.addf %41, %45 : vector<22x64xf32>
    %c2 = arith.constant 2 : index
    %c0_34 = arith.constant 0 : index
    %47 = vector.load %arg12[%c2, %c0_34] : memref<36x64xf32, #tpu.memory_space<vmem>>, vector<22x64xf32>
    %c2_35 = arith.constant 2 : index
    %c0_36 = arith.constant 0 : index
    %c0_37 = arith.constant 0 : index
    %48 = vector.load %arg8[%c2_35, %c0_36, %c0_37] : memref<9x64x64xf32, #tpu.memory_space<vmem>>, vector<1x64x64xf32>
    %49 = vector.shape_cast %48 : vector<1x64x64xf32> to vector<64x64xf32>
    %cst_38 = arith.constant dense<0.000000e+00> : vector<22x64xf32>
    %50 = tpu.matmul %47, %49, %cst_38 {dimension_numbers = #tpu.dot_dimension_numbers<[1], [0], [0], [1], [0, 0, 1, 1], [], []>} : vector<22x64xf32>, vector<64x64xf32>, vector<22x64xf32> -> vector<22x64xf32>
    %51 = arith.addf %46, %50 : vector<22x64xf32>
    %c6 = arith.constant 6 : index
    %c0_39 = arith.constant 0 : index
    %52 = vector.load %arg12[%c6, %c0_39] : memref<36x64xf32, #tpu.memory_space<vmem>>, vector<22x64xf32>
    %c3 = arith.constant 3 : index
    %c0_40 = arith.constant 0 : index
    %c0_41 = arith.constant 0 : index
    %53 = vector.load %arg8[%c3, %c0_40, %c0_41] : memref<9x64x64xf32, #tpu.memory_space<vmem>>, vector<1x64x64xf32>
    %54 = vector.shape_cast %53 : vector<1x64x64xf32> to vector<64x64xf32>
    %cst_42 = arith.constant dense<0.000000e+00> : vector<22x64xf32>
    %55 = tpu.matmul %52, %54, %cst_42 {dimension_numbers = #tpu.dot_dimension_numbers<[1], [0], [0], [1], [0, 0, 1, 1], [], []>} : vector<22x64xf32>, vector<64x64xf32>, vector<22x64xf32> -> vector<22x64xf32>
    %56 = arith.addf %51, %55 : vector<22x64xf32>
    %c7 = arith.constant 7 : index
    %c0_43 = arith.constant 0 : index
    %57 = vector.load %arg12[%c7, %c0_43] : memref<36x64xf32, #tpu.memory_space<vmem>>, vector<22x64xf32>
    %c4 = arith.constant 4 : index
    %c0_44 = arith.constant 0 : index
    %c0_45 = arith.constant 0 : index
    %58 = vector.load %arg8[%c4, %c0_44, %c0_45] : memref<9x64x64xf32, #tpu.memory_space<vmem>>, vector<1x64x64xf32>
    %59 = vector.shape_cast %58 : vector<1x64x64xf32> to vector<64x64xf32>
    %cst_46 = arith.constant dense<0.000000e+00> : vector<22x64xf32>
    %60 = tpu.matmul %57, %59, %cst_46 {dimension_numbers = #tpu.dot_dimension_numbers<[1], [0], [0], [1], [0, 0, 1, 1], [], []>} : vector<22x64xf32>, vector<64x64xf32>, vector<22x64xf32> -> vector<22x64xf32>
    %61 = arith.addf %56, %60 : vector<22x64xf32>
    %c8 = arith.constant 8 : index
    %c0_47 = arith.constant 0 : index
    %62 = vector.load %arg12[%c8, %c0_47] : memref<36x64xf32, #tpu.memory_space<vmem>>, vector<22x64xf32>
    %c5 = arith.constant 5 : index
    %c0_48 = arith.constant 0 : index
    %c0_49 = arith.constant 0 : index
    %63 = vector.load %arg8[%c5, %c0_48, %c0_49] : memref<9x64x64xf32, #tpu.memory_space<vmem>>, vector<1x64x64xf32>
    %64 = vector.shape_cast %63 : vector<1x64x64xf32> to vector<64x64xf32>
    %cst_50 = arith.constant dense<0.000000e+00> : vector<22x64xf32>
    %65 = tpu.matmul %62, %64, %cst_50 {dimension_numbers = #tpu.dot_dimension_numbers<[1], [0], [0], [1], [0, 0, 1, 1], [], []>} : vector<22x64xf32>, vector<64x64xf32>, vector<22x64xf32> -> vector<22x64xf32>
    %66 = arith.addf %61, %65 : vector<22x64xf32>
    %c12 = arith.constant 12 : index
    %c0_51 = arith.constant 0 : index
    %67 = vector.load %arg12[%c12, %c0_51] : memref<36x64xf32, #tpu.memory_space<vmem>>, vector<22x64xf32>
    %c6_52 = arith.constant 6 : index
    %c0_53 = arith.constant 0 : index
    %c0_54 = arith.constant 0 : index
    %68 = vector.load %arg8[%c6_52, %c0_53, %c0_54] : memref<9x64x64xf32, #tpu.memory_space<vmem>>, vector<1x64x64xf32>
    %69 = vector.shape_cast %68 : vector<1x64x64xf32> to vector<64x64xf32>
    %cst_55 = arith.constant dense<0.000000e+00> : vector<22x64xf32>
    %70 = tpu.matmul %67, %69, %cst_55 {dimension_numbers = #tpu.dot_dimension_numbers<[1], [0], [0], [1], [0, 0, 1, 1], [], []>} : vector<22x64xf32>, vector<64x64xf32>, vector<22x64xf32> -> vector<22x64xf32>
    %71 = arith.addf %66, %70 : vector<22x64xf32>
    %c13 = arith.constant 13 : index
    %c0_56 = arith.constant 0 : index
    %72 = vector.load %arg12[%c13, %c0_56] : memref<36x64xf32, #tpu.memory_space<vmem>>, vector<22x64xf32>
    %c7_57 = arith.constant 7 : index
    %c0_58 = arith.constant 0 : index
    %c0_59 = arith.constant 0 : index
    %73 = vector.load %arg8[%c7_57, %c0_58, %c0_59] : memref<9x64x64xf32, #tpu.memory_space<vmem>>, vector<1x64x64xf32>
    %74 = vector.shape_cast %73 : vector<1x64x64xf32> to vector<64x64xf32>
    %cst_60 = arith.constant dense<0.000000e+00> : vector<22x64xf32>
    %75 = tpu.matmul %72, %74, %cst_60 {dimension_numbers = #tpu.dot_dimension_numbers<[1], [0], [0], [1], [0, 0, 1, 1], [], []>} : vector<22x64xf32>, vector<64x64xf32>, vector<22x64xf32> -> vector<22x64xf32>
    %76 = arith.addf %71, %75 : vector<22x64xf32>
    %c14 = arith.constant 14 : index
    %c0_61 = arith.constant 0 : index
    %77 = vector.load %arg12[%c14, %c0_61] : memref<36x64xf32, #tpu.memory_space<vmem>>, vector<22x64xf32>
    %c8_62 = arith.constant 8 : index
    %c0_63 = arith.constant 0 : index
    %c0_64 = arith.constant 0 : index
    %78 = vector.load %arg8[%c8_62, %c0_63, %c0_64] : memref<9x64x64xf32, #tpu.memory_space<vmem>>, vector<1x64x64xf32>
    %79 = vector.shape_cast %78 : vector<1x64x64xf32> to vector<64x64xf32>
    %cst_65 = arith.constant dense<0.000000e+00> : vector<22x64xf32>
    %80 = tpu.matmul %77, %79, %cst_65 {dimension_numbers = #tpu.dot_dimension_numbers<[1], [0], [0], [1], [0, 0, 1, 1], [], []>} : vector<22x64xf32>, vector<64x64xf32>, vector<22x64xf32> -> vector<22x64xf32>
    %81 = arith.addf %76, %80 : vector<22x64xf32>
    %c0_66 = arith.constant 0 : index
    %c0_67 = arith.constant 0 : index
    %82 = vector.load %arg7[%c0_66, %c0_67] : memref<22x1xf32, #tpu.memory_space<vmem>>, vector<22x1xf32>
    %83 = vector.broadcast %82 : vector<22x1xf32> to vector<22x64xf32>
    %84 = arith.mulf %81, %83 : vector<22x64xf32>
    %cst_68 = arith.constant dense<0.000000e+00> : vector<64xf32>
    %85 = vector.multi_reduction <add>, %84, %cst_68 [0] : vector<22x64xf32> to vector<64xf32>
    %86 = vector.shape_cast %85 : vector<64xf32> to vector<1x64xf32>
    %87 = arith.mulf %84, %81 : vector<22x64xf32>
    %cst_69 = arith.constant dense<0.000000e+00> : vector<64xf32>
    %88 = vector.multi_reduction <add>, %87, %cst_69 [0] : vector<22x64xf32> to vector<64xf32>
    %89 = vector.shape_cast %88 : vector<64xf32> to vector<1x64xf32>
    %c0_70 = arith.constant 0 : index
    %c0_71 = arith.constant 0 : index
    %90 = vector.load %arg9[%c0_70, %c0_71] : memref<1x64xf32, #tpu.memory_space<vmem>>, vector<1x64xf32>
    %c0_72 = arith.constant 0 : index
    %c0_73 = arith.constant 0 : index
    %91 = vector.load %arg10[%c0_72, %c0_73] : memref<1x64xf32, #tpu.memory_space<vmem>>, vector<1x64xf32>
    %c0_74 = arith.constant 0 : index
    %c0_75 = arith.constant 0 : index
    %92 = vector.load %arg5[%c0_74, %c0_75] : memref<64x64xf32, #tpu.memory_space<vmem>>, vector<64x64xf32>
    %cst_76 = arith.constant dense<0.000000e+00> : vector<1x64xf32>
    %93 = tpu.matmul %86, %92, %cst_76 {dimension_numbers = #tpu.dot_dimension_numbers<[1], [0], [0], [1], [0, 0, 1, 1], [], []>} : vector<1x64xf32>, vector<64x64xf32>, vector<1x64xf32> -> vector<1x64xf32>
    %cst_77 = arith.constant dense<0.000000e+00> : vector<1x64xf32>
    %94 = tpu.matmul %89, %92, %cst_77 {dimension_numbers = #tpu.dot_dimension_numbers<[1], [0], [0], [1], [0, 0, 1, 1], [], []>} : vector<1x64xf32>, vector<64x64xf32>, vector<1x64xf32> -> vector<1x64xf32>
    %cst_78 = arith.constant 3.200000e+01 : f32
    %95 = vector.broadcast %cst_78 : f32 to vector<1x64xf32>
    %96 = arith.divf %93, %95 : vector<1x64xf32>
    %cst_79 = arith.constant 3.200000e+01 : f32
    %97 = vector.broadcast %cst_79 : f32 to vector<1x64xf32>
    %98 = arith.divf %94, %97 : vector<1x64xf32>
    %99 = arith.mulf %96, %96 : vector<1x64xf32>
    %100 = arith.subf %98, %99 : vector<1x64xf32>
    %cst_80 = arith.constant 0.000000e+00 : f32
    %101 = vector.broadcast %cst_80 : f32 to vector<1x64xf32>
    %102 = arith.maximumf %100, %101 : vector<1x64xf32>
    %cst_81 = arith.constant 9.99999974E-6 : f32
    %103 = vector.broadcast %cst_81 : f32 to vector<1x64xf32>
    %104 = arith.addf %102, %103 : vector<1x64xf32>
    %105 = math.rsqrt %104 : vector<1x64xf32>
    %106 = arith.mulf %90, %105 : vector<1x64xf32>
    %107 = arith.mulf %96, %106 : vector<1x64xf32>
    %108 = arith.subf %91, %107 : vector<1x64xf32>
    %109 = vector.broadcast %106 : vector<1x64xf32> to vector<22x64xf32>
    %110 = arith.mulf %81, %109 : vector<22x64xf32>
    %111 = vector.broadcast %108 : vector<1x64xf32> to vector<22x64xf32>
    %112 = arith.addf %110, %111 : vector<22x64xf32>
    %cst_82 = arith.constant 0.000000e+00 : f32
    %113 = vector.broadcast %cst_82 : f32 to vector<22x64xf32>
    %114 = arith.maximumf %112, %113 : vector<22x64xf32>
    %115 = vector.broadcast %82 : vector<22x1xf32> to vector<22x64xf32>
    %116 = arith.mulf %114, %115 : vector<22x64xf32>
    %cst_83 = arith.constant 0.000000e+00 : f32
    %117 = vector.broadcast %cst_83 : f32 to vector<36x64xf32>
    %c0_84 = arith.constant 0 : index
    %c0_85 = arith.constant 0 : index
    %c0_86 = arith.constant 0 : index
    %118 = vector.load %arg11[%c0_84, %c0_85, %c0_86] : memref<1x36x64xf32, #tpu.memory_space<vmem>>, vector<1x36x64xf32>
    %119 = vector.shape_cast %118 : vector<1x36x64xf32> to vector<36x64xf32>
    %120 = vector.shape_cast %117 : vector<36x64xf32> to vector<1x36x64xf32>
    tpu.vector_store %arg11[%c0_84, %c0_85, %c0_86], %120 {strides = array<i32>} : memref<1x36x64xf32, #tpu.memory_space<vmem>>, vector<1x36x64xf32>,
    %c0_87 = arith.constant 0 : index
    %c7_88 = arith.constant 7 : index
    %c0_89 = arith.constant 0 : index
    %121 = vector.load %arg11[%c0_87, %c7_88, %c0_89] : memref<1x36x64xf32, #tpu.memory_space<vmem>>, vector<1x22x64xf32>
    %122 = vector.shape_cast %121 : vector<1x22x64xf32> to vector<22x64xf32>
    %123 = vector.shape_cast %116 : vector<22x64xf32> to vector<1x22x64xf32>
    tpu.vector_store %arg11[%c0_87, %c7_88, %c0_89], %123 {strides = array<i32>} : memref<1x36x64xf32, #tpu.memory_space<vmem>>, vector<1x22x64xf32>,
    return
  }
  func.func @transform_0(%arg0: i32) -> (i32, i32, i32) {
    %c0_i32 = arith.constant 0 : i32
    %c0_i32_0 = arith.constant 0 : i32
    %c0_i32_1 = arith.constant 0 : i32
    return %arg0, %c0_i32, %c0_i32_0 : i32, i32, i32
  }
  func.func @transform_1(%arg0: i32) -> (i32, i32) {
    %c0_i32 = arith.constant 0 : i32
    %c0_i32_0 = arith.constant 0 : i32
    %c0_i32_1 = arith.constant 0 : i32
    return %c0_i32, %c0_i32_0 : i32, i32
  }
  func.func @transform_2(%arg0: i32) -> (i32, i32) {
    %c0_i32 = arith.constant 0 : i32
    %c0_i32_0 = arith.constant 0 : i32
    %c0_i32_1 = arith.constant 0 : i32
    return %c0_i32, %c0_i32_0 : i32, i32
  }
  func.func @transform_3(%arg0: i32) -> (i32, i32) {
    %c0_i32 = arith.constant 0 : i32
    %c0_i32_0 = arith.constant 0 : i32
    %c0_i32_1 = arith.constant 0 : i32
    return %c0_i32, %c0_i32_0 : i32, i32
  }
  func.func @transform_4(%arg0: i32) -> (i32, i32) {
    %c0_i32 = arith.constant 0 : i32
    %c0_i32_0 = arith.constant 0 : i32
    %c0_i32_1 = arith.constant 0 : i32
    return %c0_i32, %c0_i32_0 : i32, i32
  }
  func.func @transform_5(%arg0: i32) -> (i32, i32) {
    %c0_i32 = arith.constant 0 : i32
    %c0_i32_0 = arith.constant 0 : i32
    %c0_i32_1 = arith.constant 0 : i32
    return %c0_i32, %c0_i32_0 : i32, i32
  }
  func.func @transform_6(%arg0: i32) -> (i32, i32) {
    %c0_i32 = arith.constant 0 : i32
    %c0_i32_0 = arith.constant 0 : i32
    %c0_i32_1 = arith.constant 0 : i32
    return %c0_i32, %c0_i32_0 : i32, i32
  }
  func.func @transform_7(%arg0: i32) -> (i32, i32, i32) {
    %c0_i32 = arith.constant 0 : i32
    %c0_i32_0 = arith.constant 0 : i32
    %c0_i32_1 = arith.constant 0 : i32
    %c0_i32_2 = arith.constant 0 : i32
    return %c0_i32, %c0_i32_0, %c0_i32_1 : i32, i32, i32
  }
  func.func @transform_8(%arg0: i32) -> (i32, i32) {
    %c0_i32 = arith.constant 0 : i32
    %c0_i32_0 = arith.constant 0 : i32
    %c0_i32_1 = arith.constant 0 : i32
    return %c0_i32, %c0_i32_0 : i32, i32
  }
  func.func @transform_9(%arg0: i32) -> (i32, i32) {
    %c0_i32 = arith.constant 0 : i32
    %c0_i32_0 = arith.constant 0 : i32
    %c0_i32_1 = arith.constant 0 : i32
    return %c0_i32, %c0_i32_0 : i32, i32
  }
  func.func @transform_10(%arg0: i32) -> (i32, i32, i32) {
    %c0_i32 = arith.constant 0 : i32
    %c0_i32_0 = arith.constant 0 : i32
    %c0_i32_1 = arith.constant 0 : i32
    return %arg0, %c0_i32, %c0_i32_0 : i32, i32, i32
  }
}

</mosaic_0001>

<bundles_post_ra>
// kernel: tpu_custom_call.1
= control target key start
LH: loop header
LB: loop body
LE: loop exit
PB: predicated region body
PF: predicated region fallthrough
CT: control target
= control target key end

     0   :  { %15 = vsyncpa [#allocation4], 0  ;;  %s2657_s13 = smov 0   ;;  %s3157_s0 = inlined_call_operand.vmem [shape: f32[2,36,64], index: 0, kind: input, shape index: {}]   ;;  %s3158_s1 = inlined_call_operand.vmem [shape: f32[64,64], index: 1, kind: input, shape index: {}]   ;;  %s3159_s2 = inlined_call_operand.vmem [shape: f32[1,64], index: 2, kind: input, shape index: {}]   ;;  %s3160_s3 = inlined_call_operand.vmem [shape: f32[1,64], index: 3, kind: input, shape index: {}]   ;;  %s3161_s4 = inlined_call_operand.vmem [shape: f32[64,64], index: 4, kind: input, shape index: {}]   ;;  %s3162_s5 = inlined_call_operand.vmem [shape: f32[36,1], index: 5, kind: input, shape index: {}]   ;;  %s3163_s6 = inlined_call_operand.vmem [shape: f32[22,1], index: 6, kind: input, shape index: {}]   ;;  %s3164_s7 = inlined_call_operand.hbm [shape: f32[9,64,64], index: 7, kind: input, shape index: {}]   ;;  %s3165_s8 = inlined_call_operand.vmem [shape: f32[1,64], index: 8, kind: input, shape index: {}]   ;;  %s3166_s9 = inlined_call_operand.vmem [shape: f32[1,64], index: 9, kind: input, shape index: {}]   ;;  %s3167_s10 = inlined_call_operand.vmem [shape: f32[2,36,64], index: 10, kind: output, shape index: {}]  }
   0x1 LB: > { %s2663_s14 = sadd.s32 4294967295, %s2594_s13   ;;  %p2002_p0 = scmp.ge.s32.totalorder %s2594_s13, 1  ;;  %s2594_s13 = sphi %s2657_s13, %s21_s13  }
   0x2   : > { %p267_p1 = scmp.lt.s32.totalorder %s2594_s13, 3  ;;  %s2596_s15 = smov [#allocation3]  }
   0x3   : > { %s297_s16 = sshll.u32 %s2596_s15, 4  ;;  %p2536_p3 = scmp.eq.s32.totalorder %s2663_s14, 0  ;;  %s298_s16 = int_to_ptr.vmem [resolvable:$true] %s297_s16 }
   0x4   : > { %p2667_p2 = pnand %p2002_p0, %p267_p1  ;;  %s2569_s18 = scalar_lea.vmem %s298_s16, 9216 }
   0x5   : > { %p2570_p7 = scmp.ne.s32.totalorder %s298_s16, %s2569_s18  ;;  %p2577_p10 = scmp.lt.s32.totalorder %s298_s16, %s298_s16 }
   0x6   : > { %p2532_p4 = pneg %p2667_p2  ;;  %p2578_p11 = scmp.lt.s32.totalorder %s2569_s18, %s2569_s18 }
   0x8   : > { %p2533_p5 = pnand %p2536_p3, %p2532_p4  ;;  %p2579_p12 = por %p2578_p11, %p2577_p10 }
   0xa   : > { %p2560_p6 = pneg %p2533_p5 }
   0xc   : > { %p2572_p8 = pnand %p2570_p7, %p2560_p6 }
   0xe   : > { %p2573_p9 = pneg %p2572_p8 }
  0x10   : > { %p2580_p13 = pnand %p2579_p12, %p2573_p9 }
  0x12   : > { %2583 = shalt.err (!%p2580_p13)
}
  0x13   : > { %s2597_s19 = smov 128   ;;  %s2598_s20 = smov 8  }
  0x14   : > { %2535 = dma.hbm_to_vmem [thread:$0]  (!%p2533_p5), %s3164_s7, 9216, %s298_s16, [#allocation4], %s2597_s19, %s2597_s19, %s2598_s20  }
  0x15   : > { %327 = sbr.rel (%p2667_p2) target bundleno = 1056 (0x420), region = 60 }
  0x1a   : > { %2589 = dma.done.wait (%p2536_p3), [#allocation4], 9216  }
  0x1b   : > { %2591 = vsyncadd (%p2536_p3), [#allocation4], 4294958080  ;;  %p365_p0 = scmp.lt.s32.totalorder %s2663_s14, 1  ;;  %v2599_v0 = vmov 0.0   ;;  %vm2600_vm0 = vmmov 0   ;;  %vm388_vm1 = vcmask 523264  }
  0x1c   : > { %2195 = vmatprep.subr.mxu0 %v2599_v0  ;;  %2211 = vmatprep.mubr.msk.f32.mxu0 %vm2600_vm0, %v2599_v0  ;;  %v387_v1 = vld [vmem:[%s3158_s1 + $0x38] sm:$0xff]  ;;  %v386_v2 = vld [vmem:[%s3158_s1 + $0x30] sm:$0xff]  ;;  %v385_v3 = vld [vmem:[%s3158_s1 + $0x28] sm:$0xff]  ;;  %vm501_vm2 = vcmask 519168   ;;  %v2601_v23 = vmov 0   ;;  %vm1712_vm3 = vcmask 521216  }
  0x1d   : > { %s3170_s14 = smov (!%p365_p0, %s2663_s14), 1  ;;  %2226 = vmatprep.subr.mxu1 %v2599_v0  ;;  %2242 = vmatprep.mubr.msk.f32.mxu1 %vm2600_vm0, %v2599_v0  ;;  %v384_v4 = vld [vmem:[%s3158_s1 + $0x20] sm:$0xff]  ;;  %v383_v5 = vld [vmem:[%s3158_s1 + $0x18] sm:$0xff]  ;;  %v382_v6 = vld [vmem:[%s3158_s1 + $0x10] sm:$0xff] }
  0x1e   : > { %s2527_s23 = smul.u32 40, %s3170_s14  ;;  %2196 = vmatpush3.msra.mxu0 %v387_v1  ;;  %v381_v7 = vld [vmem:[%s3158_s1 + $0x8] sm:$0xff]  ;;  %v380_v8 = vld [vmem:[%s3158_s1] sm:$0xff]  ;;  %v2763_v14 = vld [vmem:[%s3161_s4 + $0x38] sm:$0xff]  ;;  %2552 = vset.pattern.permute.xlu0 %v2601_v23 }
  0x1f   : > { %2197 = vmatprep.subr.mxu0 %v2599_v0  ;;  %2227 = vmatpush3.msra.mxu1 %v2763_v14  ;;  %v2773_v15 = vld [vmem:[%s3161_s4 + $0x30] sm:$0xff]  ;;  %v2780_v16 = vld [vmem:[%s3161_s4 + $0x28] sm:$0xff]  ;;  %v2787_v17 = vld [vmem:[%s3161_s4 + $0x20] sm:$0xff] }
  0x20   : > { %s2696_s26 = scalar_lea.vmem %s3167_s10, %s2527_s23  ;;  %2198 = vmatpush3.msra.mxu0 %v386_v2  ;;  %s369_s25 = scalar_lea.vmem %s3157_s0, %s2527_s23  ;;  %2228 = vmatprep.subr.mxu1 %v2599_v0  ;;  %v2794_v18 = vld [vmem:[%s3161_s4 + $0x18] sm:$0xff]  ;;  %v2801_v19 = vld [vmem:[%s3161_s4 + $0x10] sm:$0xff]  ;;  %v2808_v20 = vld [vmem:[%s3161_s4 + $0x8] sm:$0xff] }
  0x21   : > { %1925 = vst.msk [vmem:[%s2696_s26] sm:$0xff] %vm388_vm1, %v2599_v0  ;;  %1926 = vst.msk [vmem:[%s2696_s26 + $0x8] sm:$0xff] %vm388_vm1, %v2599_v0  ;;  %2199 = vmatprep.subr.mxu0 %v2599_v0  ;;  %v375_v9 = vld [vmem:[%s369_s25] sm:$0xff]  ;;  %v376_v10 = vld [vmem:[%s369_s25 + $0x8] sm:$0xff]  ;;  %2229 = vmatpush3.msra.mxu1 %v2773_v15 }
  0x22   : > { %1927 = vst.msk [vmem:[%s2696_s26 + $0x10] sm:$0xff] %vm388_vm1, %v2599_v0  ;;  %1928 = vst.msk [vmem:[%s2696_s26 + $0x18] sm:$0xff] %vm388_vm1, %v2599_v0  ;;  %2200 = vmatpush3.msra.mxu0 %v385_v3  ;;  %v377_v11 = vld [vmem:[%s369_s25 + $0x10] sm:$0xff]  ;;  %v378_v12 = vld [vmem:[%s369_s25 + $0x18] sm:$0xff]  ;;  %2230 = vmatprep.subr.mxu1 %v2599_v0 }
  0x23   : > { %2201 = vmatprep.subr.mxu0 %v2599_v0  ;;  %v379_v13 = vld [vmem:[%s369_s25 + $0x20] sm:$0xf]  ;;  %1929 = vst.msk [vmem:[%s2696_s26 + $0x20] sm:$0xf] %vm501_vm2, %v2599_v0  ;;  %2231 = vmatpush3.msra.mxu1 %v2780_v16  ;;  %v721_v24 = vld [vmem:[%s3162_s5 + $0x10] sm:$0xff]  ;;  %v720_v25 = vld [vmem:[%s3162_s5 + $0x8] sm:$0xff] }
  0x24   : > { %2202 = vmatpush3.msra.mxu0 %v384_v4  ;;  %2232 = vmatprep.subr.mxu1 %v2599_v0  ;;  %v2815_v21 = vld [vmem:[%s3161_s4] sm:$0xff]  ;;  %v722_v26 = vld [vmem:[%s3162_s5 + $0x18] sm:$0xff]  ;;  %v1689_v29 = vld [vmem:[%s3163_s6 + $0x8] sm:$0xff] }
  0x25   : > { %2203 = vmatprep.subr.mxu0 %v2599_v0  ;;  %2233 = vmatpush3.msra.mxu1 %v2787_v17  ;;  %v719_v22 = vld [vmem:[%s3162_s5] sm:$0xff]  ;;  %v1690_v30 = vld [vmem:[%s3163_s6 + $0x10] sm:$0x3f] }
  0x26   : > { %2204 = vmatpush3.msra.mxu0 %v383_v5  ;;  %2234 = vmatprep.subr.mxu1 %v2599_v0  ;;  %v723_v27 = vld [vmem:[%s3162_s5 + $0x20] sm:$0xf] }
  0x27   : > { %2205 = vmatprep.subr.mxu0 %v2599_v0  ;;  %2235 = vmatpush3.msra.mxu1 %v2794_v18  ;;  %v1688_v28 = vld [vmem:[%s3163_s6] sm:$0xff] }
  0x28   : > { %2206 = vmatpush3.msra.mxu0 %v382_v6  ;;  %2236 = vmatprep.subr.mxu1 %v2599_v0 }
  0x29   : > { %2207 = vmatprep.subr.mxu0 %v2599_v0  ;;  %2237 = vmatpush3.msra.mxu1 %v2801_v19 }
  0x2a   : > { %2208 = vmatpush3.msra.mxu0 %v381_v7  ;;  %2238 = vmatprep.subr.mxu1 %v2599_v0 }
  0x2b   : > { %2209 = vmatprep.subr.mxu0 %v2599_v0  ;;  %2239 = vmatpush3.msra.mxu1 %v2808_v20 }
  0x2c   : > { %2210 = vmatpush3.msra.mxu0 %v380_v8  ;;  %2240 = vmatprep.subr.mxu1 %v2599_v0 }
  0x2d   : > { %2212 = vmatmul.mubr.msk.f32.vlgmr.msra.gmra.mxu0 %vm388_vm1, %v375_v9  ;;  %2264 = vmatprep.subr.mxu0 %v2599_v0 }
  0x2e   : > { %2214 = vmatprep.mubr.msk.f32.mxu0 %vm2600_vm0, %v2599_v0  ;;  %2241 = vmatpush3.msra.mxu1 %v2815_v21 }
  0x2f   : > { %2245 = vmatprep.subr.mxu1 %v2599_v0  ;;  %2553 = vset.pattern.permute.xlu1 %v2601_v23  ;;  %v776_v23 = vld [vmem:[#allocation3 + $0x50] sm:$0xff] }
  0x30   : > { %726 = vperm.xlu0 %2552, %v719_v22   ;;  %736 = vperm.xlu1 %2553, %v721_v24   ;;  %v765_v22 = vld [vmem:[#allocation3 + $0x18] sm:$0xff]  ;;  %v764_v24 = vld [vmem:[#allocation3 + $0x10] sm:$0xff] }
  0x31   : > { %2215 = vmatmul.mubr.msk.f32.gmra.mxu0 %vm388_vm1, %v376_v10 }
  0x32   : > { %2217 = vmatprep.mubr.msk.f32.mxu0 %vm2600_vm0, %v2599_v0 }
  0x34   : > { %731 = vperm.xlu0 %2552, %v720_v25   ;;  %741 = vperm.xlu1 %2553, %v722_v26   ;;  %v775_v25 = vld [vmem:[#allocation3 + $0x48] sm:$0xff] }
  0x35   : > { %2218 = vmatmul.mubr.msk.f32.gmra.mxu0 %vm388_vm1, %v377_v11  ;;  %v763_v26 = vld [vmem:[#allocation3 + $0x8] sm:$0xff] }
  0x36   : > { %2220 = vmatprep.mubr.msk.f32.mxu0 %vm2600_vm0, %v2599_v0 }
  0x38   : > { %746 = vperm.xlu0 %2552, %v723_v27   ;;  %1693 = vperm.xlu1 %2553, %v1688_v28   ;;  %v774_v27 = vld [vmem:[#allocation3 + $0x40] sm:$0xff] }
  0x39   : > { %2221 = vmatmul.mubr.msk.f32.gmra.mxu0 %vm388_vm1, %v378_v12  ;;  %v762_v28 = vld [vmem:[#allocation3] sm:$0xff] }
  0x3a   : > { %2223 = vmatprep.mubr.msk.f32.mxu0 %vm2600_vm0, %v2599_v0 }
  0x3c   : > { %1698 = vperm.xlu0 %2552, %v1689_v29   ;;  %1703 = vperm.xlu1 %2553, %v1690_v30  }
  0x3d   : > { %2224 = vmatmul.mubr.msk.f32.gmra.mxu0 %vm388_vm1, %v379_v13  ;;  %v781_v13 = vld [vmem:[#allocation3 + $0x78] sm:$0xff] }
  0x3e   : > { %2280 = vmatprep.mubr.msk.f32.mxu0 %vm2600_vm0, %v2599_v0  ;;  %2265 = vmatpush3.msra.mxu0 %v781_v13  ;;  %v969_v13 = vld [vmem:[#allocation3 + $0xa8] sm:$0xff] }
  0x3f   : > { %2266 = vmatprep.subr.mxu0 %v2599_v0 }
  0xed   : > { %v2843_v31 = vpop.f32.mrf.mxu0 }
  0xee   : > { %v494_v39 = vsel %vm388_vm1, %v2843_v31, 0.0  ;;  %v510_v40 = vmul.f32 %v2843_v31, %v2843_v31 }
  0xef   : > { %v2213_v32 = vpop.f32.mrf.mxu0 }
  0xf0   : > { %v515_v50 = vsel %vm388_vm1, %v510_v40, 0.0 }
  0xf1   : > { %v2845_v33 = vpop.f32.mrf.mxu0 }
  0xf2   : > { %v495_v36 = vsel %vm388_vm1, %v2845_v33, 0.0  ;;  %v511_v37 = vmul.f32 %v2845_v33, %v2845_v33 }
  0xf3   : > { %v2216_v34 = vpop.f32.mrf.mxu0  ;;  %v496_v43 = vadd.f32 %v495_v36, %v494_v39 }
  0xf4   : > { %v516_v45 = vsel %vm388_vm1, %v511_v37, 0.0 }
  0xf5   : > { %v2847_v35 = vpop.f32.mrf.mxu0  ;;  %v517_v52 = vadd.f32 %v516_v45, %v515_v50  ;;  %v530_v45 = vld [vmem:[%s3159_s2] sm:$0x1] }
  0xf6   : > { %v497_v41 = vsel %vm388_vm1, %v2847_v35, 0.0  ;;  %v512_v42 = vmul.f32 %v2847_v35, %v2847_v35  ;;  %v531_v50 = vld [vmem:[%s3160_s3] sm:$0x1] }
  0xf7   : > { %v2219_v38 = vpop.f32.mrf.mxu0  ;;  %v498_v48 = vadd.f32 %v497_v41, %v496_v43 }
  0xf8   : > { %v518_v51 = vsel %vm388_vm1, %v512_v42, 0.0  ;;  %v698_v42 = vlaneseq }
  0xf9   : > { %v2861_v44 = vpop.f32.mrf.mxu0  ;;  %v519_v58 = vadd.f32 %v518_v51, %v517_v52 }
  0xfa   : > { %v499_v46 = vsel %vm388_vm1, %v2861_v44, 0.0  ;;  %v513_v47 = vmul.f32 %v2861_v44, %v2861_v44  ;;  %v699_v43 = vshrl.u32 %v698_v42, 7  ;;  %v1176_v42 = vld [vmem:[#allocation3 + $0x120] sm:$0xff] }
  0xfb   : > { %v2222_v49 = vpop.f32.mrf.mxu0  ;;  %v500_v53 = vadd.f32 %v499_v46, %v498_v48  ;;  %v727_v46 = vpop.permute.xlu0 %726 }
  0xfc   : > { %v520_v55 = vsel %vm388_vm1, %v513_v47, 0.0  ;;  %v2919_v47 = vsub.s32 0, %v699_v43  ;;  %v1280_v43 = vld [vmem:[#allocation3 + $0x160] sm:$0xff] }
  0xfd   : > { %v2870_v54 = vpop.f32.mrf.mxu0  ;;  %v521_v62 = vadd.f32 %v520_v55, %v519_v58 }
  0xfe   : > { %v502_v56 = vsel %vm501_vm2, %v2870_v54, 0.0  ;;  %v514_v57 = vmul.f32 %v2870_v54, %v2870_v54 }
  0xff   : > { %v503_v59 = vadd.f32 %v502_v56, %v500_v53  ;;  %v2225_v60 = vpop.f32.mrf.mxu0  ;;  %v737_v53 = vpop.permute.xlu1 %736 }
 0x100   : > { %v522_v61 = vsel %vm501_vm2, %v514_v57, 0.0  ;;  %v732_v55 = vpop.permute.xlu0 %731 }
 0x101   : > { %v504_v63 = vrot.slane %v503_v59, 4  ;;  %v523_v2 = vadd.f32 %v522_v61, %v521_v62 }
 0x103   : > { %v505_v1 = vadd.f32 %v504_v63, %v503_v59  ;;  %v524_v5 = vrot.slane %v523_v2, 4 }
 0x105   : > { %v506_v3 = vrot.slane %v505_v1, 2  ;;  %v525_v7 = vadd.f32 %v524_v5, %v523_v2  ;;  %v747_v5 = vpop.permute.xlu0 %746 }
 0x107   : > { %v507_v4 = vadd.f32 %v506_v3, %v505_v1  ;;  %v526_v9 = vrot.slane %v525_v7, 2 }
 0x109   : > { %v508_v6 = vrot.slane %v507_v4, 1  ;;  %v527_v10 = vadd.f32 %v526_v9, %v525_v7 }
 0x10b   : > { %v509_v8 = vadd.f32 %v508_v6, %v507_v4  ;;  %v528_v11 = vrot.slane %v527_v10, 1  ;;  %v742_v4 = vpop.permute.xlu1 %741 }
 0x10d   : > { %2243 = vmatmul.mubr.msk.f32.vlgmr.msra.gmra.mxu1 %vm388_vm1, %v509_v8  ;;  %v529_v12 = vadd.f32 %v528_v11, %v527_v10  ;;  %v970_v11 = vld [vmem:[#allocation3 + $0xb0] sm:$0xff] }
 0x10e   : > { %2246 = vmatpush3.msra.mxu1 %v2763_v14  ;;  %2261 = vmatprep.mubr.msk.f32.mxu1 %vm2600_vm0, %v2599_v0  ;;  %v769_v14 = vld [vmem:[#allocation3 + $0x38] sm:$0xff] }
 0x10f   : > { %2247 = vmatprep.subr.mxu1 %v2599_v0 }
 0x110   : > { %2248 = vmatpush3.msra.mxu1 %v2773_v15  ;;  %v780_v15 = vld [vmem:[#allocation3 + $0x70] sm:$0xff] }
 0x111   : > { %2249 = vmatprep.subr.mxu1 %v2599_v0  ;;  %2267 = vmatpush3.msra.mxu0 %v780_v15 }
 0x112   : > { %2250 = vmatpush3.msra.mxu1 %v2780_v16  ;;  %v768_v16 = vld [vmem:[#allocation3 + $0x30] sm:$0xff]  ;;  %2268 = vmatprep.subr.mxu0 %v2599_v0 }
 0x113   : > { %2251 = vmatprep.subr.mxu1 %v2599_v0 }
 0x114   : > { %2252 = vmatpush3.msra.mxu1 %v2787_v17  ;;  %v779_v17 = vld [vmem:[#allocation3 + $0x68] sm:$0xff] }
 0x115   : > { %2253 = vmatprep.subr.mxu1 %v2599_v0  ;;  %2269 = vmatpush3.msra.mxu0 %v779_v17  ;;  %v968_v17 = vld [vmem:[#allocation3 + $0xa0] sm:$0xff] }
 0x116   : > { %2254 = vmatpush3.msra.mxu1 %v2794_v18  ;;  %v767_v18 = vld [vmem:[#allocation3 + $0x28] sm:$0xff]  ;;  %2270 = vmatprep.subr.mxu0 %v2599_v0 }
 0x117   : > { %2255 = vmatprep.subr.mxu1 %v2599_v0 }
 0x118   : > { %2256 = vmatpush3.msra.mxu1 %v2801_v19  ;;  %v778_v19 = vld [vmem:[#allocation3 + $0x60] sm:$0xff] }
 0x119   : > { %2257 = vmatprep.subr.mxu1 %v2599_v0  ;;  %2271 = vmatpush3.msra.mxu0 %v778_v19  ;;  %v967_v19 = vld [vmem:[#allocation3 + $0x98] sm:$0xff] }
 0x11a   : > { %2258 = vmatpush3.msra.mxu1 %v2808_v20  ;;  %v766_v20 = vld [vmem:[#allocation3 + $0x20] sm:$0xff]  ;;  %2272 = vmatprep.subr.mxu0 %v2599_v0 }
 0x11b   : > { %2259 = vmatprep.subr.mxu1 %v2599_v0 }
 0x11c   : > { %2260 = vmatpush3.msra.mxu1 %v2815_v21  ;;  %v777_v21 = vld [vmem:[#allocation3 + $0x58] sm:$0xff] }
 0x11d   : > { %2262 = vmatmul.mubr.msk.f32.vlgmr.msra.gmra.mxu1 %vm388_vm1, %v529_v12  ;;  %2289 = vmatprep.subr.mxu1 %v2599_v0  ;;  %v1074_v12 = vld [vmem:[#allocation3 + $0xf0] sm:$0xff] }
 0x11e   : > { %2305 = vmatprep.mubr.msk.f32.mxu1 %vm2600_vm0, %v2599_v0  ;;  %2290 = vmatpush3.msra.mxu1 %v769_v14  ;;  %v1073_v14 = vld [vmem:[#allocation3 + $0xe8] sm:$0xff] }
 0x11f   : > { %2291 = vmatprep.subr.mxu1 %v2599_v0  ;;  %2273 = vmatpush3.msra.mxu0 %v777_v21 }
 0x120   : > { %2292 = vmatpush3.msra.mxu1 %v768_v16  ;;  %2274 = vmatprep.subr.mxu0 %v2599_v0 }
 0x121   : > { %2293 = vmatprep.subr.mxu1 %v2599_v0  ;;  %2275 = vmatpush3.msra.mxu0 %v776_v23  ;;  %v966_v23 = vld [vmem:[#allocation3 + $0x90] sm:$0xff] }
 0x122   : > { %2294 = vmatpush3.msra.mxu1 %v767_v18  ;;  %2276 = vmatprep.subr.mxu0 %v2599_v0  ;;  %v1072_v18 = vld [vmem:[#allocation3 + $0xe0] sm:$0xff] }
 0x123   : > { %2295 = vmatprep.subr.mxu1 %v2599_v0  ;;  %2277 = vmatpush3.msra.mxu0 %v775_v25  ;;  %v965_v25 = vld [vmem:[#allocation3 + $0x88] sm:$0xff] }
 0x124   : > { %2296 = vmatpush3.msra.mxu1 %v766_v20  ;;  %2278 = vmatprep.subr.mxu0 %v2599_v0  ;;  %v1071_v20 = vld [vmem:[#allocation3 + $0xd8] sm:$0xff] }
 0x125   : > { %2297 = vmatprep.subr.mxu1 %v2599_v0  ;;  %2279 = vmatpush3.msra.mxu0 %v774_v27  ;;  %v964_v27 = vld [vmem:[#allocation3 + $0x80] sm:$0xff] }
 0x126   : > { %2298 = vmatpush3.msra.mxu1 %v765_v22  ;;  %2314 = vmatprep.subr.mxu0 %v2599_v0 }
 0x127   : > { %2299 = vmatprep.subr.mxu1 %v2599_v0 }
 0x128   : > { %2300 = vmatpush3.msra.mxu1 %v764_v24  ;;  %v1070_v24 = vld [vmem:[#allocation3 + $0xd0] sm:$0xff] }
 0x129   : > { %2301 = vmatprep.subr.mxu1 %v2599_v0 }
 0x12a   : > { %2302 = vmatpush3.msra.mxu1 %v763_v26  ;;  %v1069_v26 = vld [vmem:[#allocation3 + $0xc8] sm:$0xff] }
 0x12b   : > { %2303 = vmatprep.subr.mxu1 %v2599_v0 }
 0x12c   : > { %2304 = vmatpush3.msra.mxu1 %v762_v28  ;;  %v1068_v28 = vld [vmem:[#allocation3 + $0xc0] sm:$0xff] }
 0x12d   : > { %2339 = vmatprep.subr.mxu1 %v2599_v0 }
 0x1cd   : > { %v609_v29 = vpop.f32.mrf.mxu1 }
 0x1ce   : > { %v687_v32 = vmul.f32 0.03125, %v609_v29  ;;  %v1179_v29 = vld [vmem:[#allocation3 + $0x138] sm:$0xff] }
 0x1cf   : > { %v2244_v30 = vpop.f32.mrf.mxu1 }
 0x1d0   : > { %v689_v36 = vmul.f32 %v687_v32, %v687_v32 }
 0x1dd   : > { %v682_v34 = vpop.f32.mrf.mxu1 }
 0x1de   : > { %v688_v37 = vmul.f32 0.03125, %v682_v34  ;;  %v1283_v34 = vld [vmem:[#allocation3 + $0x178] sm:$0xff] }
 0x1df   : > { %v2263_v38 = vpop.f32.mrf.mxu1 }
 0x1e0   : > { %v690_v39 = vsub.f32 %v688_v37, %v689_v36  ;;  %v1178_v36 = vld [vmem:[#allocation3 + $0x130] sm:$0xff]  ;;  %v1177_v38 = vld [vmem:[#allocation3 + $0x128] sm:$0xff] }
 0x1e1   : > { %v1282_v37 = vld [vmem:[#allocation3 + $0x170] sm:$0xff] }
 0x1e2   : > { %v691_v40 = vmax.f32 %v690_v39, 0.0 }
 0x1e4   : > { %v692_v41 = vadd.f32 1e-05, %v691_v40 }
 0x1e6   : > { %2554 = vrsqrt.f32 %v692_v41  ;;  %v1281_v41 = vld [vmem:[#allocation3 + $0x168] sm:$0xff] }
 0x1f3   : > { %v2555_v48 = vpop.eup %2554 }
 0x1f4   : > { %v694_v49 = vmul.f32 %v2555_v48, %v530_v45  ;;  %v1175_v45 = vld [vmem:[#allocation3 + $0x118] sm:$0xff] }
 0x1f6   : > { %v695_v51 = vmul.f32 %v694_v49, %v687_v32  ;;  %v701_v52 = vrot.slane %v694_v49, %v2919_v47  ;;  %v1279_v49 = vld [vmem:[#allocation3 + $0x158] sm:$0xff] }
 0x1f8   : > { %v696_v56 = vsub.f32 %v531_v50, %v695_v51  ;;  %v703_v57 = vmul.f32 %v701_v52, %v2843_v31  ;;  %v704_v59 = vmul.f32 %v701_v52, %v2845_v33  ;;  %v707_v60 = vmul.f32 %v701_v52, %v2870_v54  ;;  %v971_v33 = vld [vmem:[#allocation3 + $0xb8] sm:$0xff]  ;;  %v1174_v50 = vld [vmem:[#allocation3 + $0x110] sm:$0xff] }
 0x1f9   : > { %v705_v61 = vmul.f32 %v701_v52, %v2847_v35  ;;  %v706_v62 = vmul.f32 %v701_v52, %v2861_v44  ;;  %v1075_v35 = vld [vmem:[#allocation3 + $0xf8] sm:$0xff]  ;;  %v1278_v51 = vld [vmem:[#allocation3 + $0x150] sm:$0xff]  ;;  %v1173_v52 = vld [vmem:[#allocation3 + $0x108] sm:$0xff] }
 0x1fa   : > { %v712_v58 = vrot.slane %v696_v56, %v2919_v47  ;;  %v1276_v56 = vld [vmem:[#allocation3 + $0x140] sm:$0xff] }
 0x1fc   : > { %v714_v63 = vadd.f32 %v712_v58, %v703_v57  ;;  %v715_v1 = vadd.f32 %v712_v58, %v704_v59  ;;  %v718_v2 = vadd.f32 %v712_v58, %v707_v60  ;;  %v716_v3 = vadd.f32 %v712_v58, %v705_v61  ;;  %v1491_v59 = vld [vmem:[#allocation3 + $0x1f8] sm:$0xff]  ;;  %v1386_v60 = vld [vmem:[#allocation3 + $0x1b0] sm:$0xff] }
 0x1fd   : > { %v717_v6 = vadd.f32 %v712_v58, %v706_v62  ;;  %v1387_v58 = vld [vmem:[#allocation3 + $0x1b8] sm:$0xff]  ;;  %v1490_v61 = vld [vmem:[#allocation3 + $0x1f0] sm:$0xff]  ;;  %v1385_v62 = vld [vmem:[#allocation3 + $0x1a8] sm:$0xff] }
 0x1fe   : > { %v749_v7 = vmul.f32 %v727_v46, %v714_v63  ;;  %v750_v8 = vmul.f32 %v732_v55, %v715_v1  ;;  %v753_v31 = vmul.f32 %v747_v5, %v718_v2  ;;  %v751_v9 = vmul.f32 %v737_v53, %v716_v3  ;;  %v1277_v53 = vld [vmem:[#allocation3 + $0x148] sm:$0xff]  ;;  %v1172_v55 = vld [vmem:[#allocation3 + $0x100] sm:$0xff]  ;;  %v1383_v5 = vld [vmem:[#allocation3 + $0x198] sm:$0xff] }
 0x1ff   : > { %v752_v10 = vmul.f32 %v742_v4, %v717_v6  ;;  %v1489_v2 = vld [vmem:[#allocation3 + $0x1e8] sm:$0xff]  ;;  %v1384_v3 = vld [vmem:[#allocation3 + $0x1a0] sm:$0xff] }
 0x200   : > { %754 = vst.msk [vmem:[#allocation2] sm:$0xff] %vm388_vm1, %v749_v7  ;;  %755 = vst.msk [vmem:[#allocation2 + $0x8] sm:$0xff] %vm388_vm1, %v750_v8  ;;  %v1488_v4 = vld [vmem:[#allocation3 + $0x1e0] sm:$0xff]  ;;  %v1487_v8 = vld [vmem:[#allocation3 + $0x1d8] sm:$0xff] }
 0x201   : > { %758 = vst.msk [vmem:[#allocation2 + $0x20] sm:$0xf] %vm501_vm2, %v753_v31  ;;  %v1382_v31 = vld [vmem:[#allocation3 + $0x190] sm:$0xff] }
 0x202   : > { %756 = vst.msk [vmem:[#allocation2 + $0x10] sm:$0xff] %vm388_vm1, %v751_v9  ;;  %757 = vst.msk [vmem:[#allocation2 + $0x18] sm:$0xff] %vm388_vm1, %v752_v10  ;;  %v1486_v9 = vld [vmem:[#allocation3 + $0x1d0] sm:$0xff]  ;;  %v1381_v10 = vld [vmem:[#allocation3 + $0x188] sm:$0xff] }
 0x207   : > { %v770_v44 = vld [vmem:[#allocation2 + $0x1] sm:$0xff] }
 0x208   : > { %v759_v54 = vld [vmem:[#allocation2] sm:$0xff]  ;;  %2281 = vmatmul.mubr.msk.f32.vlgmr.msra.gmra.mxu0 %vm388_vm1, %v770_v44  ;;  %v2946_v16 = vld [vmem:[#allocation2 + $0x8] sm:$0xff] }
 0x209   : > { %2306 = vmatmul.mubr.msk.f32.vlgmr.msra.gmra.mxu1 %vm388_vm1, %v759_v54  ;;  %2315 = vmatpush3.msra.mxu0 %v971_v33  ;;  %v771_v15 = vld [vmem:[#allocation2 + $0x9] sm:$0xff]  ;;  %v772_v21 = vld [vmem:[#allocation2 + $0x11] sm:$0x3f]  ;;  %v1170_v6 = vld [vmem:[#allocation2 + $0x17] sm:$0x3f] }
 0x20a   : > { %2340 = vmatpush3.msra.mxu1 %v1075_v35  ;;  %2316 = vmatprep.subr.mxu0 %v2599_v0  ;;  %v761_v22 = vld [vmem:[#allocation2 + $0x10] sm:$0x3f]  ;;  %v960_v30 = vld [vmem:[#allocation2 + $0x2] sm:$0xff]  ;;  %v1066_v48 = vld [vmem:[#allocation2 + $0x16] sm:$0x3f] }
 0x20b   : > { %2341 = vmatprep.subr.mxu1 %v2599_v0  ;;  %2317 = vmatpush3.msra.mxu0 %v970_v11  ;;  %v1064_v32 = vld [vmem:[#allocation2 + $0x6] sm:$0xff]  ;;  %v2981_v40 = vld [vmem:[#allocation2 + $0xe] sm:$0xff]  ;;  %v1274_v7 = vld [vmem:[#allocation2 + $0x18] sm:$0x3f] }
 0x20c   : > { %2342 = vmatpush3.msra.mxu1 %v1074_v12  ;;  %2283 = vmatprep.mubr.msk.f32.mxu0 %vm2600_vm0, %v2599_v0  ;;  %v961_v39 = vld [vmem:[#allocation2 + $0xa] sm:$0xff]  ;;  %v962_v46 = vld [vmem:[#allocation2 + $0x12] sm:$0x3f]  ;;  %v1595_v12 = vld [vmem:[#allocation3 + $0x238] sm:$0xff] }
 0x20d   : > { %2308 = vmatprep.mubr.msk.f32.mxu1 %vm2600_vm0, %v2599_v0  ;;  %2318 = vmatprep.subr.mxu0 %v2599_v0  ;;  %v1168_v57 = vld [vmem:[#allocation2 + $0x7] sm:$0xff]  ;;  %v1169_v63 = vld [vmem:[#allocation2 + $0xf] sm:$0xff] }
 0x20e   : > { %2343 = vmatprep.subr.mxu1 %v2599_v0  ;;  %2284 = vmatmul.mubr.msk.f32.gmra.mxu0 %vm388_vm1, %v771_v15  ;;  %v1273_v1 = vld [vmem:[#allocation2 + $0x10] sm:$0xff]  ;;  %v1380_v35 = vld [vmem:[#allocation3 + $0x180] sm:$0xff] }
 0x20f   : > { %2309 = vmatmul.mubr.msk.f32.gmra.mxu1 %vm388_vm1, %v2946_v16  ;;  %2319 = vmatpush3.msra.mxu0 %v969_v13  ;;  %v1485_v33 = vld [vmem:[#allocation3 + $0x1c8] sm:$0xff]  ;;  %v1484_v44 = vld [vmem:[#allocation3 + $0x1c0] sm:$0xff]  ;;  %v1594_v13 = vld [vmem:[#allocation3 + $0x230] sm:$0xff] }
 0x210   : > { %2344 = vmatpush3.msra.mxu1 %v1073_v14  ;;  %2320 = vmatprep.subr.mxu0 %v2599_v0  ;;  %v1376_v54 = vld [vmem:[#allocation2 + $0xc] sm:$0xff]  ;;  %v1481_v14 = vld [vmem:[#allocation2 + $0x15] sm:$0xff] }
 0x211   : > { %2345 = vmatprep.subr.mxu1 %v2599_v0  ;;  %2321 = vmatpush3.msra.mxu0 %v968_v17  ;;  %v1480_v11 = vld [vmem:[#allocation2 + $0xd] sm:$0xff] }
 0x212   : > { %2346 = vmatpush3.msra.mxu1 %v1072_v18  ;;  %2286 = vmatprep.mubr.msk.f32.mxu0 %vm2600_vm0, %v2599_v0  ;;  %v1593_v15 = vld [vmem:[#allocation3 + $0x228] sm:$0xff]  ;;  %v1592_v17 = vld [vmem:[#allocation3 + $0x220] sm:$0xff]  ;;  %v1482_v18 = vld [vmem:[#allocation2 + $0x1d] sm:$0x3f] }
 0x213   : > { %2311 = vmatprep.mubr.msk.f32.mxu1 %vm2600_vm0, %v2599_v0  ;;  %2322 = vmatprep.subr.mxu0 %v2599_v0 }
 0x214   : > { %2347 = vmatprep.subr.mxu1 %v2599_v0  ;;  %2287 = vmatmul.mubr.msk.f32.gmra.mxu0 %vm388_vm1, %v772_v21  ;;  %v1590_v21 = vld [vmem:[#allocation3 + $0x210] sm:$0xff] }
 0x215   : > { %2312 = vmatmul.mubr.msk.f32.gmra.mxu1 %vm388_vm1, %v761_v22  ;;  %2323 = vmatpush3.msra.mxu0 %v967_v19  ;;  %v1591_v19 = vld [vmem:[#allocation3 + $0x218] sm:$0xff]  ;;  %v1589_v22 = vld [vmem:[#allocation3 + $0x208] sm:$0xff] }
 0x216   : > { %2348 = vmatpush3.msra.mxu1 %v1071_v20  ;;  %2324 = vmatprep.subr.mxu0 %v2599_v0  ;;  %v1378_v20 = vld [vmem:[#allocation2 + $0x1c] sm:$0x3f] }
 0x217   : > { %2349 = vmatprep.subr.mxu1 %v2599_v0  ;;  %2325 = vmatpush3.msra.mxu0 %v966_v23  ;;  %v1588_v23 = vld [vmem:[#allocation3 + $0x200] sm:$0xff] }
 0x218   : > { %2350 = vmatpush3.msra.mxu1 %v1070_v24  ;;  %2326 = vmatprep.subr.mxu0 %v2599_v0  ;;  %v1585_v24 = vld [vmem:[#allocation2 + $0x16] sm:$0xff] }
 0x219   : > { %2351 = vmatprep.subr.mxu1 %v2599_v0  ;;  %2327 = vmatpush3.msra.mxu0 %v965_v25  ;;  %v1586_v25 = vld [vmem:[#allocation2 + $0x1e] sm:$0x3f] }
 0x21a   : > { %2352 = vmatpush3.msra.mxu1 %v1069_v26  ;;  %2328 = vmatprep.subr.mxu0 %v2599_v0  ;;  %v1744_v26 = vld [vmem:[%s3161_s4 + $0x38] sm:$0xff] }
 0x21b   : > { %2353 = vmatprep.subr.mxu1 %v2599_v0  ;;  %2329 = vmatpush3.msra.mxu0 %v964_v27  ;;  %v1743_v27 = vld [vmem:[%s3161_s4 + $0x30] sm:$0xff] }
 0x21c   : > { %2330 = vmatprep.mubr.msk.f32.mxu0 %vm2600_vm0, %v2599_v0  ;;  %2354 = vmatpush3.msra.mxu1 %v1068_v28  ;;  %v1742_v28 = vld [vmem:[%s3161_s4 + $0x28] sm:$0xff] }
 0x21d   : > { %2355 = vmatprep.mubr.msk.f32.mxu1 %vm2600_vm0, %v2599_v0  ;;  %2331 = vmatmul.mubr.msk.f32.vlgmr.msra.gmra.mxu0 %vm388_vm1, %v960_v30  ;;  %v1740_v30 = vld [vmem:[%s3161_s4 + $0x18] sm:$0xff] }
 0x21e   : > { %2356 = vmatmul.mubr.msk.f32.vlgmr.msra.gmra.mxu1 %vm388_vm1, %v1064_v32  ;;  %2364 = vmatprep.subr.mxu0 %v2599_v0  ;;  %v1739_v32 = vld [vmem:[%s3161_s4 + $0x10] sm:$0xff] }
 0x21f   : > { %2389 = vmatprep.subr.mxu1 %v2599_v0  ;;  %2365 = vmatpush3.msra.mxu0 %v1179_v29  ;;  %v1741_v29 = vld [vmem:[%s3161_s4 + $0x20] sm:$0xff] }
 0x220   : > { %2390 = vmatpush3.msra.mxu1 %v1283_v34  ;;  %2366 = vmatprep.subr.mxu0 %v2599_v0  ;;  %v1738_v34 = vld [vmem:[%s3161_s4 + $0x8] sm:$0xff] }
 0x221   : > { %2391 = vmatprep.subr.mxu1 %v2599_v0  ;;  %2333 = vmatprep.mubr.msk.f32.mxu0 %vm2600_vm0, %v2599_v0 }
 0x222   : > { %2358 = vmatprep.mubr.msk.f32.mxu1 %vm2600_vm0, %v2599_v0  ;;  %2367 = vmatpush3.msra.mxu0 %v1178_v36  ;;  %v1737_v36 = vld [vmem:[%s3161_s4] sm:$0xff] }
 0x223   : > { %2392 = vmatpush3.msra.mxu1 %v1282_v37  ;;  %2334 = vmatmul.mubr.msk.f32.gmra.mxu0 %vm388_vm1, %v961_v39 }
 0x224   : > { %2359 = vmatmul.mubr.msk.f32.gmra.mxu1 %vm388_vm1, %v2981_v40  ;;  %2368 = vmatprep.subr.mxu0 %v2599_v0 }
 0x225   : > { %2393 = vmatprep.subr.mxu1 %v2599_v0  ;;  %2369 = vmatpush3.msra.mxu0 %v1177_v38 }
 0x226   : > { %2394 = vmatpush3.msra.mxu1 %v1281_v41  ;;  %2370 = vmatprep.subr.mxu0 %v2599_v0 }
 0x227   : > { %2395 = vmatprep.subr.mxu1 %v2599_v0  ;;  %2336 = vmatprep.mubr.msk.f32.mxu0 %vm2600_vm0, %v2599_v0 }
 0x228   : > { %2361 = vmatprep.mubr.msk.f32.mxu1 %vm2600_vm0, %v2599_v0  ;;  %2371 = vmatpush3.msra.mxu0 %v1176_v42 }
 0x229   : > { %2396 = vmatpush3.msra.mxu1 %v1280_v43  ;;  %2337 = vmatmul.mubr.msk.f32.gmra.mxu0 %vm388_vm1, %v962_v46 }
 0x22a   : > { %2362 = vmatmul.mubr.msk.f32.gmra.mxu1 %vm388_vm1, %v1066_v48  ;;  %2372 = vmatprep.subr.mxu0 %v2599_v0 }
 0x22b   : > { %2397 = vmatprep.subr.mxu1 %v2599_v0  ;;  %2373 = vmatpush3.msra.mxu0 %v1175_v45 }
 0x22c   : > { %2398 = vmatpush3.msra.mxu1 %v1279_v49  ;;  %2374 = vmatprep.subr.mxu0 %v2599_v0 }
 0x22d   : > { %2399 = vmatprep.subr.mxu1 %v2599_v0  ;;  %2375 = vmatpush3.msra.mxu0 %v1174_v50 }
 0x22e   : > { %2400 = vmatpush3.msra.mxu1 %v1278_v51  ;;  %2376 = vmatprep.subr.mxu0 %v2599_v0 }
 0x22f   : > { %2401 = vmatprep.subr.mxu1 %v2599_v0  ;;  %2377 = vmatpush3.msra.mxu0 %v1173_v52 }
 0x230   : > { %2402 = vmatpush3.msra.mxu1 %v1277_v53  ;;  %2378 = vmatprep.subr.mxu0 %v2599_v0 }
 0x231   : > { %2403 = vmatprep.subr.mxu1 %v2599_v0  ;;  %2379 = vmatpush3.msra.mxu0 %v1172_v55 }
 0x232   : > { %2380 = vmatprep.mubr.msk.f32.mxu0 %vm2600_vm0, %v2599_v0  ;;  %2404 = vmatpush3.msra.mxu1 %v1276_v56 }
 0x233   : > { %2405 = vmatprep.mubr.msk.f32.mxu1 %vm2600_vm0, %v2599_v0  ;;  %2381 = vmatmul.mubr.msk.f32.vlgmr.msra.gmra.mxu0 %vm388_vm1, %v1168_v57 }
 0x234   : > { %2406 = vmatmul.mubr.msk.f32.vlgmr.msra.gmra.mxu1 %vm388_vm1, %v2946_v16  ;;  %2414 = vmatprep.subr.mxu0 %v2599_v0  ;;  %v1377_v16 = vld [vmem:[#allocation2 + $0x14] sm:$0xff] }
 0x235   : > { %2439 = vmatprep.subr.mxu1 %v2599_v0  ;;  %2415 = vmatpush3.msra.mxu0 %v1387_v58 }
 0x236   : > { %2440 = vmatpush3.msra.mxu1 %v1491_v59  ;;  %2416 = vmatprep.subr.mxu0 %v2599_v0 }
 0x237   : > { %2441 = vmatprep.subr.mxu1 %v2599_v0  ;;  %2383 = vmatprep.mubr.msk.f32.mxu0 %vm2600_vm0, %v2599_v0 }
 0x238   : > { %2408 = vmatprep.mubr.msk.f32.mxu1 %vm2600_vm0, %v2599_v0  ;;  %2417 = vmatpush3.msra.mxu0 %v1386_v60 }
 0x239   : > { %2442 = vmatpush3.msra.mxu1 %v1490_v61  ;;  %2384 = vmatmul.mubr.msk.f32.gmra.mxu0 %vm388_vm1, %v1169_v63 }
 0x23a   : > { %2409 = vmatmul.mubr.msk.f32.gmra.mxu1 %vm388_vm1, %v1273_v1  ;;  %2418 = vmatprep.subr.mxu0 %v2599_v0 }
 0x23b   : > { %2443 = vmatprep.subr.mxu1 %v2599_v0  ;;  %2419 = vmatpush3.msra.mxu0 %v1385_v62 }
 0x23c   : > { %2444 = vmatpush3.msra.mxu1 %v1489_v2  ;;  %2420 = vmatprep.subr.mxu0 %v2599_v0 }
 0x23d   : > { %2445 = vmatprep.subr.mxu1 %v2599_v0  ;;  %2386 = vmatprep.mubr.msk.f32.mxu0 %vm2600_vm0, %v2599_v0 }
 0x23e   : > { %2411 = vmatprep.mubr.msk.f32.mxu1 %vm2600_vm0, %v2599_v0  ;;  %2421 = vmatpush3.msra.mxu0 %v1384_v3 }
 0x23f   : > { %2446 = vmatpush3.msra.mxu1 %v1488_v4  ;;  %2387 = vmatmul.mubr.msk.f32.gmra.mxu0 %vm388_vm1, %v1170_v6 }
 0x240   : > { %2412 = vmatmul.mubr.msk.f32.gmra.mxu1 %vm388_vm1, %v1274_v7  ;;  %2422 = vmatprep.subr.mxu0 %v2599_v0 }
 0x241   : > { %2447 = vmatprep.subr.mxu1 %v2599_v0  ;;  %2423 = vmatpush3.msra.mxu0 %v1383_v5 }
 0x242   : > { %2448 = vmatpush3.msra.mxu1 %v1487_v8  ;;  %2424 = vmatprep.subr.mxu0 %v2599_v0 }
 0x243   : > { %2449 = vmatprep.subr.mxu1 %v2599_v0  ;;  %2425 = vmatpush3.msra.mxu0 %v1382_v31 }
 0x244   : > { %2450 = vmatpush3.msra.mxu1 %v1486_v9  ;;  %2426 = vmatprep.subr.mxu0 %v2599_v0 }
 0x245   : > { %2451 = vmatprep.subr.mxu1 %v2599_v0  ;;  %2427 = vmatpush3.msra.mxu0 %v1381_v10 }
 0x246   : > { %2452 = vmatpush3.msra.mxu1 %v1485_v33  ;;  %2428 = vmatprep.subr.mxu0 %v2599_v0 }
 0x247   : > { %2453 = vmatprep.subr.mxu1 %v2599_v0  ;;  %2429 = vmatpush3.msra.mxu0 %v1380_v35 }
 0x248   : > { %2430 = vmatprep.mubr.msk.f32.mxu0 %vm2600_vm0, %v2599_v0  ;;  %2454 = vmatpush3.msra.mxu1 %v1484_v44 }
 0x249   : > { %2455 = vmatprep.mubr.msk.f32.mxu1 %vm2600_vm0, %v2599_v0  ;;  %2431 = vmatmul.mubr.msk.f32.vlgmr.msra.gmra.mxu0 %vm388_vm1, %v1376_v54 }
 0x24a   : > { %2456 = vmatmul.mubr.msk.f32.vlgmr.msra.gmra.mxu1 %vm388_vm1, %v1480_v11  ;;  %2464 = vmatprep.subr.mxu0 %v2599_v0 }
 0x24b   : > { %2433 = vmatprep.mubr.msk.f32.mxu0 %vm2600_vm0, %v2599_v0  ;;  %2465 = vmatpush3.msra.mxu0 %v1595_v12 }
 0x24c   : > { %2458 = vmatprep.mubr.msk.f32.mxu1 %vm2600_vm0, %v2599_v0  ;;  %2466 = vmatprep.subr.mxu0 %v2599_v0 }
 0x24d   : > { %2489 = vmatprep.subr.mxu1 %v2599_v0  ;;  %2467 = vmatpush3.msra.mxu0 %v1594_v13 }
 0x24e   : > { %2459 = vmatmul.mubr.msk.f32.gmra.mxu1 %vm388_vm1, %v1481_v14  ;;  %2434 = vmatmul.mubr.msk.f32.gmra.mxu0 %vm388_vm1, %v1377_v16 }
 0x24f   : > { %2468 = vmatprep.subr.mxu0 %v2599_v0  ;;  %2436 = vmatprep.mubr.msk.f32.mxu0 %vm2600_vm0, %v2599_v0 }
 0x250   : > { %2469 = vmatpush3.msra.mxu0 %v1593_v15  ;;  %2461 = vmatprep.mubr.msk.f32.mxu1 %vm2600_vm0, %v2599_v0 }
 0x251   : > { %2470 = vmatprep.subr.mxu0 %v2599_v0  ;;  %2490 = vmatpush3.msra.mxu1 %v1744_v26 }
 0x252   : > { %2471 = vmatpush3.msra.mxu0 %v1592_v17  ;;  %2462 = vmatmul.mubr.msk.f32.gmra.mxu1 %vm388_vm1, %v1482_v18 }
 0x253   : > { %2437 = vmatmul.mubr.msk.f32.gmra.mxu0 %vm388_vm1, %v1378_v20  ;;  %2472 = vmatprep.subr.mxu0 %v2599_v0 }
 0x254   : > { %2473 = vmatpush3.msra.mxu0 %v1591_v19  ;;  %2480 = vmatprep.mubr.msk.f32.mxu0 %vm2600_vm0, %v2599_v0 }
 0x255   : > { %2474 = vmatprep.subr.mxu0 %v2599_v0  ;;  %2505 = vmatprep.mubr.msk.f32.mxu1 %vm2600_vm0, %v2599_v0 }
 0x256   : > { %2475 = vmatpush3.msra.mxu0 %v1590_v21  ;;  %2491 = vmatprep.subr.mxu1 %v2599_v0 }
 0x257   : > { %2476 = vmatprep.subr.mxu0 %v2599_v0  ;;  %2492 = vmatpush3.msra.mxu1 %v1743_v27 }
 0x258   : > { %2477 = vmatpush3.msra.mxu0 %v1589_v22  ;;  %2493 = vmatprep.subr.mxu1 %v2599_v0 }
 0x259   : > { %2478 = vmatprep.subr.mxu0 %v2599_v0  ;;  %2494 = vmatpush3.msra.mxu1 %v1742_v28 }
 0x25a   : > { %2479 = vmatpush3.msra.mxu0 %v1588_v23  ;;  %2495 = vmatprep.subr.mxu1 %v2599_v0 }
 0x25b   : > { %2481 = vmatmul.mubr.msk.f32.vlgmr.msra.gmra.mxu0 %vm388_vm1, %v2981_v40  ;;  %2508 = vmatprep.subr.mxu0 %v2599_v0 }
 0x25c   : > { %2483 = vmatprep.mubr.msk.f32.mxu0 %vm2600_vm0, %v2599_v0  ;;  %2509 = vmatpush3.msra.mxu0 %v1744_v26 }
 0x25d   : > { %2510 = vmatprep.subr.mxu0 %v2599_v0  ;;  %2496 = vmatpush3.msra.mxu1 %v1741_v29 }
 0x25e   : > { %2511 = vmatpush3.msra.mxu0 %v1743_v27  ;;  %2497 = vmatprep.subr.mxu1 %v2599_v0 }
 0x25f   : > { %2484 = vmatmul.mubr.msk.f32.gmra.mxu0 %vm388_vm1, %v1585_v24  ;;  %2512 = vmatprep.subr.mxu0 %v2599_v0 }
 0x260   : > { %2486 = vmatprep.mubr.msk.f32.mxu0 %vm2600_vm0, %v2599_v0  ;;  %2513 = vmatpush3.msra.mxu0 %v1742_v28 }
 0x261   : > { %2514 = vmatprep.subr.mxu0 %v2599_v0  ;;  %2498 = vmatpush3.msra.mxu1 %v1740_v30 }
 0x262   : > { %2515 = vmatpush3.msra.mxu0 %v1741_v29  ;;  %2499 = vmatprep.subr.mxu1 %v2599_v0 }
 0x263   : > { %2487 = vmatmul.mubr.msk.f32.gmra.mxu0 %vm388_vm1, %v1586_v25  ;;  %2516 = vmatprep.subr.mxu0 %v2599_v0 }
 0x264   : > { %2524 = vmatprep.mubr.msk.f32.mxu0 %vm2600_vm0, %v2599_v0  ;;  %2517 = vmatpush3.msra.mxu0 %v1740_v30 }
 0x265   : > { %2518 = vmatprep.subr.mxu0 %v2599_v0  ;;  %2500 = vmatpush3.msra.mxu1 %v1739_v32 }
 0x266   : > { %2519 = vmatpush3.msra.mxu0 %v1739_v32  ;;  %2501 = vmatprep.subr.mxu1 %v2599_v0 }
 0x267   : > { %2520 = vmatprep.subr.mxu0 %v2599_v0  ;;  %2502 = vmatpush3.msra.mxu1 %v1738_v34 }
 0x268   : > { %2521 = vmatpush3.msra.mxu0 %v1738_v34  ;;  %2503 = vmatprep.subr.mxu1 %v2599_v0 }
 0x269   : > { %2522 = vmatprep.subr.mxu0 %v2599_v0  ;;  %2504 = vmatpush3.msra.mxu1 %v1737_v36 }
 0x26a   : > { %2523 = vmatpush3.msra.mxu0 %v1737_v36 }
 0x2c8   : > { %v857_v37 = vpop.f32.mrf.mxu0 }
 0x2c9   : > { %v946_v38 = vpop.f32.mrf.mxu1 }
 0x2ca   : > { %v947_v39 = vadd.f32 %v946_v38, %v857_v37  ;;  %v2282_v40 = vpop.f32.mrf.mxu0 }
 0x2cb   : > { %v2307_v41 = vpop.f32.mrf.mxu1 }
 0x2ce   : > { %v862_v42 = vpop.f32.mrf.mxu0 }
 0x2cf   : > { %v951_v43 = vpop.f32.mrf.mxu1 }
 0x2d0   : > { %v952_v45 = vadd.f32 %v951_v43, %v862_v42  ;;  %v2285_v46 = vpop.f32.mrf.mxu0 }
 0x2d1   : > { %v2310_v48 = vpop.f32.mrf.mxu1  ;;  %v3121_v46 = vpop.permute.xlu1 %1693 }
 0x2d4   : > { %v867_v49 = vpop.f32.mrf.mxu0 }
 0x2d5   : > { %v956_v50 = vpop.f32.mrf.mxu1 }
 0x2d6   : > { %v957_v51 = vadd.f32 %v956_v50, %v867_v49  ;;  %v2288_v52 = vpop.f32.mrf.mxu0 }
 0x2d7   : > { %v2313_v53 = vpop.f32.mrf.mxu1 }
 0x2dd   : > { %v1047_v55 = vpop.f32.mrf.mxu0 }
 0x2de   : > { %v1151_v56 = vpop.f32.mrf.mxu1  ;;  %v1061_v54 = vadd.f32 %v1047_v55, %v947_v39 }
 0x2df   : > { %v2332_v0 = vpop.f32.mrf.mxu0 }
 0x2e0   : > { %v2357_v57 = vpop.f32.mrf.mxu1  ;;  %v1165_v15 = vadd.f32 %v1151_v56, %v1061_v54 }
 0x2e3   : > { %v1052_v58 = vpop.f32.mrf.mxu0 }
 0x2e4   : > { %v1156_v59 = vpop.f32.mrf.mxu1  ;;  %v1062_v16 = vadd.f32 %v1052_v58, %v952_v45 }
 0x2e5   : > { %v2335_v60 = vpop.f32.mrf.mxu0 }
 0x2e6   : > { %v2360_v61 = vpop.f32.mrf.mxu1  ;;  %v1166_v22 = vadd.f32 %v1156_v59, %v1062_v16  ;;  %v1704_v60 = vpop.permute.xlu1 %1703 }
 0x2e9   : > { %v1057_v62 = vpop.f32.mrf.mxu0 }
 0x2ea   : > { %v1161_v63 = vpop.f32.mrf.mxu1  ;;  %v1063_v23 = vadd.f32 %v1057_v62, %v957_v51  ;;  %v3125_v51 = vpop.permute.xlu0 %1698 }
 0x2eb   : > { %v2338_v1 = vpop.f32.mrf.mxu0 }
 0x2ec   : > { %v2363_v2 = vpop.f32.mrf.mxu1  ;;  %v1167_v30 = vadd.f32 %v1161_v63, %v1063_v23 }
 0x2f3   : > { %v1255_v3 = vpop.f32.mrf.mxu0 }
 0x2f4   : > { %v1359_v4 = vpop.f32.mrf.mxu1  ;;  %v1269_v19 = vadd.f32 %v1255_v3, %v1165_v15 }
 0x2f5   : > { %v2382_v5 = vpop.f32.mrf.mxu0 }
 0x2f6   : > { %v2407_v6 = vpop.f32.mrf.mxu1  ;;  %v1373_v26 = vadd.f32 %v1359_v4, %v1269_v19 }
 0x2f9   : > { %v1260_v7 = vpop.f32.mrf.mxu0 }
 0x2fa   : > { %v1364_v8 = vpop.f32.mrf.mxu1  ;;  %v1270_v27 = vadd.f32 %v1260_v7, %v1166_v22 }
 0x2fb   : > { %v2385_v31 = vpop.f32.mrf.mxu0 }
 0x2fc   : > { %v2410_v9 = vpop.f32.mrf.mxu1  ;;  %v1374_v34 = vadd.f32 %v1364_v8, %v1270_v27  ;;  %v1735_v27 = vld [vmem:[%s3165_s8] sm:$0x1] }
 0x2ff   : > { %v1265_v10 = vpop.f32.mrf.mxu0 }
 0x300   : > { %v1369_v33 = vpop.f32.mrf.mxu1  ;;  %v1271_v36 = vadd.f32 %v1265_v10, %v1167_v30  ;;  %v1736_v30 = vld [vmem:[%s3166_s9] sm:$0x1] }
 0x301   : > { %v2388_v35 = vpop.f32.mrf.mxu0 }
 0x302   : > { %v2413_v44 = vpop.f32.mrf.mxu1  ;;  %v1375_v40 = vadd.f32 %v1369_v33, %v1271_v36 }
 0x309   : > { %v1463_v11 = vpop.f32.mrf.mxu0 }
 0x30a   : > { %v1567_v12 = vpop.f32.mrf.mxu1  ;;  %v1477_v32 = vadd.f32 %v1463_v11, %v1373_v26 }
 0x30b   : > { %v2432_v13 = vpop.f32.mrf.mxu0 }
 0x30c   : > { %v2457_v14 = vpop.f32.mrf.mxu1  ;;  %v1581_v37 = vadd.f32 %v1567_v12, %v1477_v32 }
 0x30e   : > { %v1572_v17 = vpop.f32.mrf.mxu1  ;;  %v1468_v18 = vpop.f32.mrf.mxu0 }
 0x30f   : > { %v1478_v38 = vadd.f32 %v1468_v18, %v1374_v34 }
 0x310   : > { %v2460_v20 = vpop.f32.mrf.mxu1  ;;  %v2435_v21 = vpop.f32.mrf.mxu0 }
 0x311   : > { %v1582_v43 = vadd.f32 %v1572_v17, %v1478_v38 }
 0x312   : > { %v1577_v24 = vpop.f32.mrf.mxu1 }
 0x313   : > { %v1473_v25 = vpop.f32.mrf.mxu0 }
 0x314   : > { %v2463_v28 = vpop.f32.mrf.mxu1  ;;  %v1479_v45 = vadd.f32 %v1473_v25, %v1375_v40 }
 0x315   : > { %v2438_v29 = vpop.f32.mrf.mxu0 }
 0x316   : > { %v1583_v53 = vadd.f32 %v1577_v24, %v1479_v45 }
 0x31b   : > { %v1671_v39 = vpop.f32.mrf.mxu0 }
 0x31c   : > { %v3119_v41 = vadd.f32 %v1671_v39, %v1581_v37 }
 0x31d   : > { %v2482_v42 = vpop.f32.mrf.mxu0 }
 0x31e   : > { %v1706_v49 = vmul.f32 %v3121_v46, %v3119_v41 }
 0x31f   : > { %v1676_v48 = vpop.f32.mrf.mxu0 }
 0x320   : > { %v1686_v50 = vadd.f32 %v1676_v48, %v1582_v43  ;;  %v1721_v0 = vmul.f32 %v1706_v49, %v3119_v41  ;;  %v1709_v62 = vsel %vm388_vm1, %v1706_v49, 0.0 }
 0x321   : > { %v2485_v52 = vpop.f32.mrf.mxu0 }
 0x322   : > { %v1707_v55 = vmul.f32 %v3125_v51, %v1686_v50  ;;  %v1724_v3 = vsel %vm388_vm1, %v1721_v0, 0.0 }
 0x323   : > { %v1681_v56 = vpop.f32.mrf.mxu0 }
 0x324   : > { %v1710_v57 = vsel %vm388_vm1, %v1707_v55, 0.0  ;;  %v1722_v58 = vmul.f32 %v1707_v55, %v1686_v50  ;;  %v1687_v59 = vadd.f32 %v1681_v56, %v1583_v53 }
 0x325   : > { %v2488_v61 = vpop.f32.mrf.mxu0  ;;  %v1711_v2 = vadd.f32 %v1710_v57, %v1709_v62 }
 0x326   : > { %v1725_v63 = vsel %vm388_vm1, %v1722_v58, 0.0  ;;  %v1708_v1 = vmul.f32 %v1704_v60, %v1687_v59 }
 0x327   : > { %v1726_v6 = vadd.f32 %v1725_v63, %v1724_v3 }
 0x328   : > { %v1713_v4 = vsel %vm1712_vm3, %v1708_v1, 0.0  ;;  %v1723_v5 = vmul.f32 %v1708_v1, %v1687_v59 }
 0x329   : > { %v1714_v7 = vadd.f32 %v1713_v4, %v1711_v2 }
 0x32a   : > { %v1727_v8 = vsel %vm1712_vm3, %v1723_v5, 0.0 }
 0x32b   : > { %v1715_v31 = vrot.slane %v1714_v7, 4  ;;  %v1728_v9 = vadd.f32 %v1727_v8, %v1726_v6 }
 0x32d   : > { %v1716_v10 = vadd.f32 %v1715_v31, %v1714_v7  ;;  %v1729_v33 = vrot.slane %v1728_v9, 4 }
 0x32f   : > { %v1717_v35 = vrot.slane %v1716_v10, 2  ;;  %v1730_v44 = vadd.f32 %v1729_v33, %v1728_v9 }
 0x331   : > { %v1718_v54 = vadd.f32 %v1717_v35, %v1716_v10  ;;  %v1731_v11 = vrot.slane %v1730_v44, 2 }
 0x333   : > { %v1719_v12 = vrot.slane %v1718_v54, 1  ;;  %v1732_v13 = vadd.f32 %v1731_v11, %v1730_v44 }
 0x335   : > { %v1720_v14 = vadd.f32 %v1719_v12, %v1718_v54  ;;  %v1733_v15 = vrot.slane %v1732_v13, 1 }
 0x337   : > { %v1734_v16 = vadd.f32 %v1733_v15, %v1732_v13  ;;  %2506 = vmatmul.mubr.msk.f32.vlgmr.msra.gmra.mxu1 %vm388_vm1, %v1720_v14 }
 0x339   : > { %2525 = vmatmul.mubr.msk.f32.vlgmr.msra.gmra.mxu0 %vm388_vm1, %v1734_v16 }
 0x3f7   : > { %v1814_v17 = vpop.f32.mrf.mxu1 }
 0x3f8   : > { %v1891_v18 = vmul.f32 0.03125, %v1814_v17 }
 0x3f9   : > { %v2507_v19 = vpop.f32.mrf.mxu1  ;;  %v1887_v20 = vpop.f32.mrf.mxu0 }
 0x3fa   : > { %v1893_v21 = vmul.f32 %v1891_v18, %v1891_v18  ;;  %v1892_v22 = vmul.f32 0.03125, %v1887_v20 }
 0x3fb   : > { %v2526_v23 = vpop.f32.mrf.mxu0 }
 0x3fc   : > { %v1894_v24 = vsub.f32 %v1892_v22, %v1893_v21 }
 0x3fe   : > { %v1895_v25 = vmax.f32 %v1894_v24, 0.0 }
 0x400   : > { %v1896_v26 = vadd.f32 1e-05, %v1895_v25 }
 0x402   : > { %2556 = vrsqrt.f32 %v1896_v26 }
 0x40f   : > { %v2557_v28 = vpop.eup %2556 }
 0x410   : > { %v1898_v29 = vmul.f32 %v2557_v28, %v1735_v27 }
 0x412   : > { %v1899_v32 = vmul.f32 %v1898_v29, %v1891_v18  ;;  %v1905_v34 = vrot.slane %v1898_v29, %v2919_v47 }
 0x414   : > { %v1900_v36 = vsub.f32 %v1736_v30, %v1899_v32  ;;  %v1907_v37 = vmul.f32 %v1905_v34, %v3119_v41  ;;  %v1908_v38 = vmul.f32 %v1905_v34, %v1686_v50  ;;  %v1909_v39 = vmul.f32 %v1905_v34, %v1687_v59 }
 0x416   : > { %v1914_v40 = vrot.slane %v1900_v36, %v2919_v47 }
 0x418   : > { %v1916_v42 = vadd.f32 %v1914_v40, %v1907_v37  ;;  %v1917_v43 = vadd.f32 %v1914_v40, %v1908_v38  ;;  %v1918_v45 = vadd.f32 %v1914_v40, %v1909_v39 }
 0x41a   : > { %v1919_v48 = vmax.f32 %v1916_v42, 0.0  ;;  %v1920_v49 = vmax.f32 %v1917_v43, 0.0  ;;  %v1921_v52 = vmax.f32 %v1918_v45, 0.0 }
 0x41c   : > { %v1922_v53 = vmul.f32 %v1919_v48, %v3121_v46  ;;  %v1923_v55 = vmul.f32 %v1920_v49, %v3125_v51  ;;  %v1924_v56 = vmul.f32 %v1921_v52, %v1704_v60 }
 0x41e   : > { %1930 = vst.msk [vmem:[%s2696_s26 + $0x7] sm:$0xff] %vm388_vm1, %v1922_v53  ;;  %1931 = vst.msk [vmem:[%s2696_s26 + $0xf] sm:$0xff] %vm388_vm1, %v1923_v55 }
 0x41f   : > { %1932 = vst.msk [vmem:[%s2696_s26 + $0x17] sm:$0x3f] %vm1712_vm3, %v1924_v56 }
 0x420 PF: > { %s21_s13 = sadd.s32 1, %s2594_s13  }
 0x421   : > { %p18_p1 = scmp.ge.s32.totalorder %s21_s13, 4  }
 0x423   :  { %20 = sbr.rel (!%p18_p1) target bundleno = 1 (0x1), region = 103 }
 0x428   :  { %1954 = vsyncpa [#allocation4], 1 }
 0x429   :  { %1956 = vsyncpa [#allocation4 + $0x1], 1 }

</bundles_post_ra>
